<compile_context>
chip_gen: v7x
topology: tpu7x:2x2x1
jax: 0.10.0
libtpu: 0.0.40
codegen_flags: <defaults>
</compile_context>

<pallas_src>
import functools

import jax
import jax.numpy as jnp
from jax.experimental import pallas as pl
from jax.experimental.pallas import tpu as pltpu


# ------------------------------- fused kernel ------------------------------ #

def _forecast_kernel(src_ref, enc_wx_ref, enc_wh_ref, enc_b_ref,
                     dec_wx_ref, dec_wh_ref, dec_b_ref,
                     dec0_xw_ref, dec0_xb_ref, gscale_ref, goff_ref,
                     fc_w_ref, fc_b_ref, out_ref,
                     *, hidden_size, num_layers, seq_len, output_window):
    H = hidden_size
    L = num_layers
    B = out_ref.shape[0]                       # padded batch (multiple of 8)
    f32 = jnp.float32

    # Small per-cell vectors loaded once (used 24x on the critical path).
    gscale = gscale_ref[...]                   # [B, 4H]  0.5 on i/f/o lanes, 1 on g
    goff = goff_ref[...]                       # [B, 4H]  0.5 on i/f/o lanes, 0 on g

    def dot(a, b):
        return jnp.dot(a, b, preferred_element_type=f32)

    def lstm_update(gates, c):
        # sigmoid-gate columns were pre-scaled by 0.5 host-side, so one full-vreg
        # tanh + a fused per-lane affine yields sigmoid(i), sigmoid(f), tanh(g),
        # sigmoid(o) simultaneously:  sigmoid(z) = 0.5*tanh(z/2) + 0.5.
        acts = jnp.tanh(gates) * gscale + goff         # [B, 4H], one EUP push
        i = acts[:, 0 * H:1 * H]                        # offset 0: free
        f = acts[:, 1 * H:2 * H]
        g = acts[:, 2 * H:3 * H]
        o = acts[:, 3 * H:4 * H]
        c_new = f * c + i * g
        h_new = o * jnp.tanh(c_new)
        return h_new, c_new

    zeros = jnp.zeros((B, H), f32)
    h = [zeros] * L
    c = [zeros] * L

    # ---------------- encoder: recurrence over the source sequence ----------
    src_all = src_ref[...]                              # [T*B, H] (features zero-padded)
    # Hoisted layer-0 input projection: one MXU dot covering every time step.
    xg0 = dot(src_all, enc_wx_ref[0])                   # [T*B, 4H]

    for t in range(seq_len):                            # static unroll
        gates0 = (xg0[t * B:(t + 1) * B, :]
                  + dot(h[0], enc_wh_ref[0]) + enc_b_ref[0])
        h[0], c[0] = lstm_update(gates0, c[0])
        for l in range(1, L):
            gates = (dot(h[l - 1], enc_wx_ref[l])
                     + dot(h[l], enc_wh_ref[l]) + enc_b_ref[l])
            h[l], c[l] = lstm_update(gates, c[l])

    # ---------------- decoder: autoregressive, seeded by src[:, -1, 0] ------
    pred = src_all[(seq_len - 1) * B:seq_len * B, 0:1]  # [B, 1]
    dec0_xw = dec0_xw_ref[...]                          # proj + w_ih (layer 0) folded
    dec0_xb = dec0_xb_ref[...]
    fc_w = fc_w_ref[...]
    fc_b = fc_b_ref[...]

    for k in range(output_window):                      # static unroll
        # layer 0 x-path: proj(1->F) folded into the input weights host-side
        gates0 = (pred * dec0_xw + dec0_xb
                  + dot(h[0], dec_wh_ref[0]) + dec_b_ref[0])
        h[0], c[0] = lstm_update(gates0, c[0])
        for l in range(1, L):
            gates = (dot(h[l - 1], dec_wx_ref[l])
                     + dot(h[l], dec_wh_ref[l]) + dec_b_ref[l])
            h[l], c[l] = lstm_update(gates, c[l])
        # fc (H -> 1) on VPU/XLU: broadcast-mul + lane reduction
        pred = jnp.sum(h[L - 1] * fc_w, axis=-1, keepdims=True) + fc_b
        out_ref[:, k:k + 1] = pred                      # direct per-step store


# ------------------------------ parameter packing --------------------------- #

def init_lstm_params(key, num_layers, input_size, hidden_size):
    """PyTorch-style uniform init, PyTorch layout: w [4H, in], gate order (i,f,g,o)."""
    scale = 1.0 / float(hidden_size) ** 0.5
    layers = []
    for layer in range(num_layers):
        in_sz = input_size if layer == 0 else hidden_size
        key, k1, k2, k3, k4 = jax.random.split(key, 5)
        w_ih = jax.random.uniform(k1, (4 * hidden_size, in_sz), jnp.float32, -scale, scale)
        w_hh = jax.random.uniform(k2, (4 * hidden_size, hidden_size), jnp.float32, -scale, scale)
        b_ih = jax.random.uniform(k3, (4 * hidden_size,), jnp.float32, -scale, scale)
        b_hh = jax.random.uniform(k4, (4 * hidden_size,), jnp.float32, -scale, scale)
        layers.append((w_ih, w_hh, b_ih, b_hh))
    return layers, key


def _gate_row_scale(hidden_size):
    """0.5 on the sigmoid gates (i, f, o), 1.0 on g — PyTorch order (i,f,g,o)."""
    H = hidden_size
    return jnp.concatenate([jnp.full((H,), 0.5), jnp.full((H,), 0.5),
                            jnp.ones((H,)), jnp.full((H,), 0.5)]).astype(jnp.float32)


def _gate_offset(hidden_size):
    H = hidden_size
    return jnp.concatenate([jnp.full((H,), 0.5), jnp.full((H,), 0.5),
                            jnp.zeros((H,)), jnp.full((H,), 0.5)]).astype(jnp.float32)


def _pack_lstm_layer(w_ih, w_hh, b_ih, b_hh, hidden_size, batch_pad):
    """PyTorch [4H,in]/(i,f,g,o) -> Wx [H,4H], Wh [H,4H], fused bias [Bp,4H] (f32).

    Sigmoid-gate rows are pre-scaled by 0.5 (tanh-based sigmoid in the kernel);
    layer-0 input rows are zero-padded up to hidden_size.
    """
    H = hidden_size
    s = _gate_row_scale(H)[:, None]                         # [4H, 1]
    in_sz = w_ih.shape[1]
    wx = jnp.pad((w_ih * s).T, ((0, H - in_sz), (0, 0)))    # [H, 4H]
    wh = (w_hh * s).T                                       # [H, 4H]
    b = (b_ih + b_hh) * s[:, 0]                             # [4H]
    b_b = jnp.broadcast_to(b[None, :], (batch_pad, 4 * H)).astype(jnp.float32)
    return wx.astype(jnp.float32), wh.astype(jnp.float32), b_b


def forecastnet_forward(src, enc_layers, dec_layers, fc_w, fc_b, proj_w, proj_b,
                        hidden_size, num_layers, output_window):
    """src: [B, T, F] -> [B, output_window, 1]  (matches the PyTorch module)."""
    B, T, F = src.shape
    H = hidden_size
    assert F <= H, "layer-0 feature dim is zero-padded up to hidden_size"
    Bp = max(8, ((B + 7) // 8) * 8)                  # pad batch to a sublane group

    def pack(layers):
        wxs, whs, bs = [], [], []
        for (wi, wh, bi, bh) in layers:
            wx, whp, b = _pack_lstm_layer(wi, wh, bi, bh, H, Bp)
            wxs.append(wx); whs.append(whp); bs.append(b)
        return jnp.stack(wxs), jnp.stack(whs), jnp.stack(bs)

    enc_wx, enc_wh, enc_b = pack(enc_layers)         # [L,H,4H], [L,H,4H], [L,Bp,4H]
    dec_wx, dec_wh, dec_b = pack(dec_layers)         # dec_wx[0] unused (proj folded)

    # Fold proj (Linear 1->F) into the decoder layer-0 input weights:
    #   proj(pred) @ w_ih0.T = pred * (proj_w[:,0] @ w_ih0.T) + proj_b @ w_ih0.T
    pw_pad = jnp.zeros((1, H), jnp.float32).at[0, :F].set(proj_w[:, 0])
    pb_pad = jnp.zeros((1, H), jnp.float32).at[0, :F].set(proj_b)
    dec0_xw_b = jnp.broadcast_to(pw_pad @ dec_wx[0], (Bp, 4 * H)).astype(jnp.float32)
    dec0_xb_b = jnp.broadcast_to(pb_pad @ dec_wx[0], (Bp, 4 * H)).astype(jnp.float32)

    # Per-lane affine that turns tanh(gates) into (sigmoid_i|sigmoid_f|tanh_g|sigmoid_o).
    gscale_b = jnp.broadcast_to(_gate_row_scale(H)[None, :], (Bp, 4 * H)).astype(jnp.float32)
    goff_b = jnp.broadcast_to(_gate_offset(H)[None, :], (Bp, 4 * H)).astype(jnp.float32)

    # fc: nn.Linear(H, 1): weight [1, H], bias [1]  (pre-broadcast rows)
    fc_w_b = jnp.broadcast_to(fc_w.reshape(1, H), (Bp, H)).astype(jnp.float32)
    fc_b_b = jnp.broadcast_to(fc_b.reshape(1, 1), (Bp, 1)).astype(jnp.float32)

    # src: [B, T, F] -> [T*Bp, H], time-major, batch/features zero-padded.
    src_t = jnp.transpose(src, (1, 0, 2)).astype(jnp.float32)
    src2d = (jnp.zeros((T, Bp, H), jnp.float32).at[:, :B, :F].set(src_t)
             .reshape(T * Bp, H))

    vmem = pl.BlockSpec(memory_space=pltpu.MemorySpace.VMEM)
    out_padded = pl.pallas_call(
        functools.partial(_forecast_kernel, hidden_size=H, num_layers=num_layers,
                          seq_len=T, output_window=output_window),
        out_shape=jax.ShapeDtypeStruct((Bp, output_window), jnp.float32),
        in_specs=[vmem] * 13,
        out_specs=vmem,
    )(src2d, enc_wx, enc_wh, enc_b, dec_wx, dec_wh, dec_b,
      dec0_xw_b, dec0_xb_b, gscale_b, goff_b, fc_w_b, fc_b_b)

    return out_padded[:B].reshape(B, output_window, 1)


# ------------------------- pure-JAX reference (fp32) ------------------------ #

def _mm(a, b):
    return jnp.matmul(a, b, precision=jax.lax.Precision.HIGHEST)


def forecastnet_reference(src, enc_layers, dec_layers, fc_w, fc_b, proj_w, proj_b,
                          hidden_size, num_layers, output_window):
    B = src.shape[0]
    H = hidden_size

    def run_lstm(x_seq, layers, hs, cs):
        hs, cs = list(hs), list(cs)
        outs = []
        for t in range(x_seq.shape[1]):
            x = x_seq[:, t, :]
            for l, (w_ih, w_hh, b_ih, b_hh) in enumerate(layers):
                z = _mm(x, w_ih.T) + b_ih + _mm(hs[l], w_hh.T) + b_hh
                i, f, g, o = jnp.split(z, 4, axis=-1)
                cs[l] = jax.nn.sigmoid(f) * cs[l] + jax.nn.sigmoid(i) * jnp.tanh(g)
                hs[l] = jax.nn.sigmoid(o) * jnp.tanh(cs[l])
                x = hs[l]
            outs.append(x)
        return jnp.stack(outs, axis=1), hs, cs

    z0 = [jnp.zeros((B, H), jnp.float32)] * num_layers
    _, hs, cs = run_lstm(src, enc_layers, z0, z0)
    dec_in = src[:, -1:, 0:1]
    preds = []
    for _ in range(output_window):
        x = _mm(dec_in, proj_w.T) + proj_b              # Linear(1, F)
        out_seq, hs, cs = run_lstm(x, dec_layers, hs, cs)
        pred = _mm(out_seq, fc_w.T) + fc_b              # Linear(H, 1)
        preds.append(pred)
        dec_in = pred
    return jnp.concatenate(preds, axis=1)               # [B, output_window, 1]


# ------------------------------------ main ---------------------------------- #

if __name__ == "__main__":
    num_features, hidden_size, num_layers, output_window = 4, 32, 2, 4
    batch, seq_len = 2, 8

    key = jax.random.PRNGKey(0)
    key, sk = jax.random.split(key)
    src = jax.random.normal(sk, (batch, seq_len, num_features), jnp.float32)

    enc_layers, key = init_lstm_params(key, num_layers, num_features, hidden_size)
    dec_layers, key = init_lstm_params(key, num_layers, num_features, hidden_size)

    fc_scale = 1.0 / float(hidden_size) ** 0.5
    key, k1, k2, k3, k4 = jax.random.split(key, 5)
    fc_w = jax.random.uniform(k1, (1, hidden_size), jnp.float32, -fc_scale, fc_scale)
    fc_b = jax.random.uniform(k2, (1,), jnp.float32, -fc_scale, fc_scale)
    proj_w = jax.random.uniform(k3, (num_features, 1), jnp.float32, -1.0, 1.0)
    proj_b = jax.random.uniform(k4, (num_features,), jnp.float32, -1.0, 1.0)

    out = forecastnet_forward(src, enc_layers, dec_layers, fc_w, fc_b,
                              proj_w, proj_b, hidden_size, num_layers,
                              output_window)
    out = jax.block_until_ready(out)
    assert out.shape == (batch, output_window, 1), out.shape
    assert out.dtype == jnp.float32
    assert bool(jnp.all(jnp.isfinite(out)))

    ref = forecastnet_reference(src, enc_layers, dec_layers, fc_w, fc_b,
                                proj_w, proj_b, hidden_size, num_layers,
                                output_window)
    assert bool(jnp.allclose(out, ref, atol=5e-3, rtol=5e-3)), \
        (jnp.max(jnp.abs(out - ref)))
    print("KERNEL_OK")
</pallas_src>

<mosaic_0001>
module attributes {stable_mosaic.version = 11 : i64} {
  func.func @_forecast_kernel(%arg0: memref<64x32xf32, #tpu.memory_space<vmem>>, %arg1: memref<2x32x128xf32, #tpu.memory_space<vmem>>, %arg2: memref<2x32x128xf32, #tpu.memory_space<vmem>>, %arg3: memref<2x8x128xf32, #tpu.memory_space<vmem>>, %arg4: memref<2x32x128xf32, #tpu.memory_space<vmem>>, %arg5: memref<2x32x128xf32, #tpu.memory_space<vmem>>, %arg6: memref<2x8x128xf32, #tpu.memory_space<vmem>>, %arg7: memref<8x128xf32, #tpu.memory_space<vmem>>, %arg8: memref<8x128xf32, #tpu.memory_space<vmem>>, %arg9: memref<8x128xf32, #tpu.memory_space<vmem>>, %arg10: memref<8x128xf32, #tpu.memory_space<vmem>>, %arg11: memref<8x32xf32, #tpu.memory_space<vmem>>, %arg12: memref<8x1xf32, #tpu.memory_space<vmem>>, %arg13: memref<8x4xf32, #tpu.memory_space<vmem>>) attributes {dimension_semantics = [], scalar_prefetch = 0 : i64, scratch_operands = 0 : i64, tpu.core_type = #tpu.core_type<tc>} {
    %c0 = arith.constant 0 : index
    %c0_0 = arith.constant 0 : index
    %0 = vector.load %arg9[%c0, %c0_0] : memref<8x128xf32, #tpu.memory_space<vmem>>, vector<8x128xf32>
    %c0_1 = arith.constant 0 : index
    %c0_2 = arith.constant 0 : index
    %1 = vector.load %arg10[%c0_1, %c0_2] : memref<8x128xf32, #tpu.memory_space<vmem>>, vector<8x128xf32>
    %cst = arith.constant 0.000000e+00 : f32
    %2 = vector.broadcast %cst : f32 to vector<8x32xf32>
    %c0_3 = arith.constant 0 : index
    %c0_4 = arith.constant 0 : index
    %3 = vector.load %arg0[%c0_3, %c0_4] : memref<64x32xf32, #tpu.memory_space<vmem>>, vector<64x32xf32>
    %c0_5 = arith.constant 0 : index
    %c0_6 = arith.constant 0 : index
    %c0_7 = arith.constant 0 : index
    %4 = vector.load %arg1[%c0_5, %c0_6, %c0_7] : memref<2x32x128xf32, #tpu.memory_space<vmem>>, vector<1x32x128xf32>
    %5 = vector.shape_cast %4 : vector<1x32x128xf32> to vector<32x128xf32>
    %cst_8 = arith.constant dense<0.000000e+00> : vector<64x128xf32>
    %6 = tpu.matmul %3, %5, %cst_8 {dimension_numbers = #tpu.dot_dimension_numbers<[1], [0], [0], [1], [0, 0, 1, 1], [], []>} : vector<64x32xf32>, vector<32x128xf32>, vector<64x128xf32> -> vector<64x128xf32>
    %7 = vector.extract_strided_slice %6 {offsets = [0, 0], sizes = [8, 128], strides = [1, 1]} : vector<64x128xf32> to vector<8x128xf32>
    %c0_9 = arith.constant 0 : index
    %c0_10 = arith.constant 0 : index
    %c0_11 = arith.constant 0 : index
    %8 = vector.load %arg2[%c0_9, %c0_10, %c0_11] : memref<2x32x128xf32, #tpu.memory_space<vmem>>, vector<1x32x128xf32>
    %9 = vector.shape_cast %8 : vector<1x32x128xf32> to vector<32x128xf32>
    %cst_12 = arith.constant dense<0.000000e+00> : vector<8x128xf32>
    %10 = tpu.matmul %2, %9, %cst_12 {dimension_numbers = #tpu.dot_dimension_numbers<[1], [0], [0], [1], [0, 0, 1, 1], [], []>} : vector<8x32xf32>, vector<32x128xf32>, vector<8x128xf32> -> vector<8x128xf32>
    %11 = arith.addf %7, %10 : vector<8x128xf32>
    %c0_13 = arith.constant 0 : index
    %c0_14 = arith.constant 0 : index
    %c0_15 = arith.constant 0 : index
    %12 = vector.load %arg3[%c0_13, %c0_14, %c0_15] : memref<2x8x128xf32, #tpu.memory_space<vmem>>, vector<1x8x128xf32>
    %13 = vector.shape_cast %12 : vector<1x8x128xf32> to vector<8x128xf32>
    %14 = arith.addf %11, %13 : vector<8x128xf32>
    %15 = math.tanh %14 : vector<8x128xf32>
    %16 = arith.mulf %15, %0 : vector<8x128xf32>
    %17 = arith.addf %16, %1 : vector<8x128xf32>
    %18 = vector.extract_strided_slice %17 {offsets = [0, 0], sizes = [8, 32], strides = [1, 1]} : vector<8x128xf32> to vector<8x32xf32>
    %19 = vector.extract_strided_slice %17 {offsets = [0, 32], sizes = [8, 32], strides = [1, 1]} : vector<8x128xf32> to vector<8x32xf32>
    %20 = vector.extract_strided_slice %17 {offsets = [0, 64], sizes = [8, 32], strides = [1, 1]} : vector<8x128xf32> to vector<8x32xf32>
    %21 = vector.extract_strided_slice %17 {offsets = [0, 96], sizes = [8, 32], strides = [1, 1]} : vector<8x128xf32> to vector<8x32xf32>
    %22 = arith.mulf %19, %2 : vector<8x32xf32>
    %23 = arith.mulf %18, %20 : vector<8x32xf32>
    %24 = arith.addf %22, %23 : vector<8x32xf32>
    %25 = math.tanh %24 : vector<8x32xf32>
    %26 = arith.mulf %21, %25 : vector<8x32xf32>
    %c1 = arith.constant 1 : index
    %c0_16 = arith.constant 0 : index
    %c0_17 = arith.constant 0 : index
    %27 = vector.load %arg1[%c1, %c0_16, %c0_17] : memref<2x32x128xf32, #tpu.memory_space<vmem>>, vector<1x32x128xf32>
    %28 = vector.shape_cast %27 : vector<1x32x128xf32> to vector<32x128xf32>
    %cst_18 = arith.constant dense<0.000000e+00> : vector<8x128xf32>
    %29 = tpu.matmul %26, %28, %cst_18 {dimension_numbers = #tpu.dot_dimension_numbers<[1], [0], [0], [1], [0, 0, 1, 1], [], []>} : vector<8x32xf32>, vector<32x128xf32>, vector<8x128xf32> -> vector<8x128xf32>
    %c1_19 = arith.constant 1 : index
    %c0_20 = arith.constant 0 : index
    %c0_21 = arith.constant 0 : index
    %30 = vector.load %arg2[%c1_19, %c0_20, %c0_21] : memref<2x32x128xf32, #tpu.memory_space<vmem>>, vector<1x32x128xf32>
    %31 = vector.shape_cast %30 : vector<1x32x128xf32> to vector<32x128xf32>
    %cst_22 = arith.constant dense<0.000000e+00> : vector<8x128xf32>
    %32 = tpu.matmul %2, %31, %cst_22 {dimension_numbers = #tpu.dot_dimension_numbers<[1], [0], [0], [1], [0, 0, 1, 1], [], []>} : vector<8x32xf32>, vector<32x128xf32>, vector<8x128xf32> -> vector<8x128xf32>
    %33 = arith.addf %29, %32 : vector<8x128xf32>
    %c1_23 = arith.constant 1 : index
    %c0_24 = arith.constant 0 : index
    %c0_25 = arith.constant 0 : index
    %34 = vector.load %arg3[%c1_23, %c0_24, %c0_25] : memref<2x8x128xf32, #tpu.memory_space<vmem>>, vector<1x8x128xf32>
    %35 = vector.shape_cast %34 : vector<1x8x128xf32> to vector<8x128xf32>
    %36 = arith.addf %33, %35 : vector<8x128xf32>
    %37 = math.tanh %36 : vector<8x128xf32>
    %38 = arith.mulf %37, %0 : vector<8x128xf32>
    %39 = arith.addf %38, %1 : vector<8x128xf32>
    %40 = vector.extract_strided_slice %39 {offsets = [0, 0], sizes = [8, 32], strides = [1, 1]} : vector<8x128xf32> to vector<8x32xf32>
    %41 = vector.extract_strided_slice %39 {offsets = [0, 32], sizes = [8, 32], strides = [1, 1]} : vector<8x128xf32> to vector<8x32xf32>
    %42 = vector.extract_strided_slice %39 {offsets = [0, 64], sizes = [8, 32], strides = [1, 1]} : vector<8x128xf32> to vector<8x32xf32>
    %43 = vector.extract_strided_slice %39 {offsets = [0, 96], sizes = [8, 32], strides = [1, 1]} : vector<8x128xf32> to vector<8x32xf32>
    %44 = arith.mulf %41, %2 : vector<8x32xf32>
    %45 = arith.mulf %40, %42 : vector<8x32xf32>
    %46 = arith.addf %44, %45 : vector<8x32xf32>
    %47 = math.tanh %46 : vector<8x32xf32>
    %48 = arith.mulf %43, %47 : vector<8x32xf32>
    %49 = vector.extract_strided_slice %6 {offsets = [8, 0], sizes = [8, 128], strides = [1, 1]} : vector<64x128xf32> to vector<8x128xf32>
    %c0_26 = arith.constant 0 : index
    %c0_27 = arith.constant 0 : index
    %c0_28 = arith.constant 0 : index
    %50 = vector.load %arg2[%c0_26, %c0_27, %c0_28] : memref<2x32x128xf32, #tpu.memory_space<vmem>>, vector<1x32x128xf32>
    %51 = vector.shape_cast %50 : vector<1x32x128xf32> to vector<32x128xf32>
    %cst_29 = arith.constant dense<0.000000e+00> : vector<8x128xf32>
    %52 = tpu.matmul %26, %51, %cst_29 {dimension_numbers = #tpu.dot_dimension_numbers<[1], [0], [0], [1], [0, 0, 1, 1], [], []>} : vector<8x32xf32>, vector<32x128xf32>, vector<8x128xf32> -> vector<8x128xf32>
    %53 = arith.addf %49, %52 : vector<8x128xf32>
    %c0_30 = arith.constant 0 : index
    %c0_31 = arith.constant 0 : index
    %c0_32 = arith.constant 0 : index
    %54 = vector.load %arg3[%c0_30, %c0_31, %c0_32] : memref<2x8x128xf32, #tpu.memory_space<vmem>>, vector<1x8x128xf32>
    %55 = vector.shape_cast %54 : vector<1x8x128xf32> to vector<8x128xf32>
    %56 = arith.addf %53, %55 : vector<8x128xf32>
    %57 = math.tanh %56 : vector<8x128xf32>
    %58 = arith.mulf %57, %0 : vector<8x128xf32>
    %59 = arith.addf %58, %1 : vector<8x128xf32>
    %60 = vector.extract_strided_slice %59 {offsets = [0, 0], sizes = [8, 32], strides = [1, 1]} : vector<8x128xf32> to vector<8x32xf32>
    %61 = vector.extract_strided_slice %59 {offsets = [0, 32], sizes = [8, 32], strides = [1, 1]} : vector<8x128xf32> to vector<8x32xf32>
    %62 = vector.extract_strided_slice %59 {offsets = [0, 64], sizes = [8, 32], strides = [1, 1]} : vector<8x128xf32> to vector<8x32xf32>
    %63 = vector.extract_strided_slice %59 {offsets = [0, 96], sizes = [8, 32], strides = [1, 1]} : vector<8x128xf32> to vector<8x32xf32>
    %64 = arith.mulf %61, %24 : vector<8x32xf32>
    %65 = arith.mulf %60, %62 : vector<8x32xf32>
    %66 = arith.addf %64, %65 : vector<8x32xf32>
    %67 = math.tanh %66 : vector<8x32xf32>
    %68 = arith.mulf %63, %67 : vector<8x32xf32>
    %c1_33 = arith.constant 1 : index
    %c0_34 = arith.constant 0 : index
    %c0_35 = arith.constant 0 : index
    %69 = vector.load %arg1[%c1_33, %c0_34, %c0_35] : memref<2x32x128xf32, #tpu.memory_space<vmem>>, vector<1x32x128xf32>
    %70 = vector.shape_cast %69 : vector<1x32x128xf32> to vector<32x128xf32>
    %cst_36 = arith.constant dense<0.000000e+00> : vector<8x128xf32>
    %71 = tpu.matmul %68, %70, %cst_36 {dimension_numbers = #tpu.dot_dimension_numbers<[1], [0], [0], [1], [0, 0, 1, 1], [], []>} : vector<8x32xf32>, vector<32x128xf32>, vector<8x128xf32> -> vector<8x128xf32>
    %c1_37 = arith.constant 1 : index
    %c0_38 = arith.constant 0 : index
    %c0_39 = arith.constant 0 : index
    %72 = vector.load %arg2[%c1_37, %c0_38, %c0_39] : memref<2x32x128xf32, #tpu.memory_space<vmem>>, vector<1x32x128xf32>
    %73 = vector.shape_cast %72 : vector<1x32x128xf32> to vector<32x128xf32>
    %cst_40 = arith.constant dense<0.000000e+00> : vector<8x128xf32>
    %74 = tpu.matmul %48, %73, %cst_40 {dimension_numbers = #tpu.dot_dimension_numbers<[1], [0], [0], [1], [0, 0, 1, 1], [], []>} : vector<8x32xf32>, vector<32x128xf32>, vector<8x128xf32> -> vector<8x128xf32>
    %75 = arith.addf %71, %74 : vector<8x128xf32>
    %c1_41 = arith.constant 1 : index
    %c0_42 = arith.constant 0 : index
    %c0_43 = arith.constant 0 : index
    %76 = vector.load %arg3[%c1_41, %c0_42, %c0_43] : memref<2x8x128xf32, #tpu.memory_space<vmem>>, vector<1x8x128xf32>
    %77 = vector.shape_cast %76 : vector<1x8x128xf32> to vector<8x128xf32>
    %78 = arith.addf %75, %77 : vector<8x128xf32>
    %79 = math.tanh %78 : vector<8x128xf32>
    %80 = arith.mulf %79, %0 : vector<8x128xf32>
    %81 = arith.addf %80, %1 : vector<8x128xf32>
    %82 = vector.extract_strided_slice %81 {offsets = [0, 0], sizes = [8, 32], strides = [1, 1]} : vector<8x128xf32> to vector<8x32xf32>
    %83 = vector.extract_strided_slice %81 {offsets = [0, 32], sizes = [8, 32], strides = [1, 1]} : vector<8x128xf32> to vector<8x32xf32>
    %84 = vector.extract_strided_slice %81 {offsets = [0, 64], sizes = [8, 32], strides = [1, 1]} : vector<8x128xf32> to vector<8x32xf32>
    %85 = vector.extract_strided_slice %81 {offsets = [0, 96], sizes = [8, 32], strides = [1, 1]} : vector<8x128xf32> to vector<8x32xf32>
    %86 = arith.mulf %83, %46 : vector<8x32xf32>
    %87 = arith.mulf %82, %84 : vector<8x32xf32>
    %88 = arith.addf %86, %87 : vector<8x32xf32>
    %89 = math.tanh %88 : vector<8x32xf32>
    %90 = arith.mulf %85, %89 : vector<8x32xf32>
    %91 = vector.extract_strided_slice %6 {offsets = [16, 0], sizes = [8, 128], strides = [1, 1]} : vector<64x128xf32> to vector<8x128xf32>
    %c0_44 = arith.constant 0 : index
    %c0_45 = arith.constant 0 : index
    %c0_46 = arith.constant 0 : index
    %92 = vector.load %arg2[%c0_44, %c0_45, %c0_46] : memref<2x32x128xf32, #tpu.memory_space<vmem>>, vector<1x32x128xf32>
    %93 = vector.shape_cast %92 : vector<1x32x128xf32> to vector<32x128xf32>
    %cst_47 = arith.constant dense<0.000000e+00> : vector<8x128xf32>
    %94 = tpu.matmul %68, %93, %cst_47 {dimension_numbers = #tpu.dot_dimension_numbers<[1], [0], [0], [1], [0, 0, 1, 1], [], []>} : vector<8x32xf32>, vector<32x128xf32>, vector<8x128xf32> -> vector<8x128xf32>
    %95 = arith.addf %91, %94 : vector<8x128xf32>
    %c0_48 = arith.constant 0 : index
    %c0_49 = arith.constant 0 : index
    %c0_50 = arith.constant 0 : index
    %96 = vector.load %arg3[%c0_48, %c0_49, %c0_50] : memref<2x8x128xf32, #tpu.memory_space<vmem>>, vector<1x8x128xf32>
    %97 = vector.shape_cast %96 : vector<1x8x128xf32> to vector<8x128xf32>
    %98 = arith.addf %95, %97 : vector<8x128xf32>
    %99 = math.tanh %98 : vector<8x128xf32>
    %100 = arith.mulf %99, %0 : vector<8x128xf32>
    %101 = arith.addf %100, %1 : vector<8x128xf32>
    %102 = vector.extract_strided_slice %101 {offsets = [0, 0], sizes = [8, 32], strides = [1, 1]} : vector<8x128xf32> to vector<8x32xf32>
    %103 = vector.extract_strided_slice %101 {offsets = [0, 32], sizes = [8, 32], strides = [1, 1]} : vector<8x128xf32> to vector<8x32xf32>
    %104 = vector.extract_strided_slice %101 {offsets = [0, 64], sizes = [8, 32], strides = [1, 1]} : vector<8x128xf32> to vector<8x32xf32>
    %105 = vector.extract_strided_slice %101 {offsets = [0, 96], sizes = [8, 32], strides = [1, 1]} : vector<8x128xf32> to vector<8x32xf32>
    %106 = arith.mulf %103, %66 : vector<8x32xf32>
    %107 = arith.mulf %102, %104 : vector<8x32xf32>
    %108 = arith.addf %106, %107 : vector<8x32xf32>
    %109 = math.tanh %108 : vector<8x32xf32>
    %110 = arith.mulf %105, %109 : vector<8x32xf32>
    %c1_51 = arith.constant 1 : index
    %c0_52 = arith.constant 0 : index
    %c0_53 = arith.constant 0 : index
    %111 = vector.load %arg1[%c1_51, %c0_52, %c0_53] : memref<2x32x128xf32, #tpu.memory_space<vmem>>, vector<1x32x128xf32>
    %112 = vector.shape_cast %111 : vector<1x32x128xf32> to vector<32x128xf32>
    %cst_54 = arith.constant dense<0.000000e+00> : vector<8x128xf32>
    %113 = tpu.matmul %110, %112, %cst_54 {dimension_numbers = #tpu.dot_dimension_numbers<[1], [0], [0], [1], [0, 0, 1, 1], [], []>} : vector<8x32xf32>, vector<32x128xf32>, vector<8x128xf32> -> vector<8x128xf32>
    %c1_55 = arith.constant 1 : index
    %c0_56 = arith.constant 0 : index
    %c0_57 = arith.constant 0 : index
    %114 = vector.load %arg2[%c1_55, %c0_56, %c0_57] : memref<2x32x128xf32, #tpu.memory_space<vmem>>, vector<1x32x128xf32>
    %115 = vector.shape_cast %114 : vector<1x32x128xf32> to vector<32x128xf32>
    %cst_58 = arith.constant dense<0.000000e+00> : vector<8x128xf32>
    %116 = tpu.matmul %90, %115, %cst_58 {dimension_numbers = #tpu.dot_dimension_numbers<[1], [0], [0], [1], [0, 0, 1, 1], [], []>} : vector<8x32xf32>, vector<32x128xf32>, vector<8x128xf32> -> vector<8x128xf32>
    %117 = arith.addf %113, %116 : vector<8x128xf32>
    %c1_59 = arith.constant 1 : index
    %c0_60 = arith.constant 0 : index
    %c0_61 = arith.constant 0 : index
    %118 = vector.load %arg3[%c1_59, %c0_60, %c0_61] : memref<2x8x128xf32, #tpu.memory_space<vmem>>, vector<1x8x128xf32>
    %119 = vector.shape_cast %118 : vector<1x8x128xf32> to vector<8x128xf32>
    %120 = arith.addf %117, %119 : vector<8x128xf32>
    %121 = math.tanh %120 : vector<8x128xf32>
    %122 = arith.mulf %121, %0 : vector<8x128xf32>
    %123 = arith.addf %122, %1 : vector<8x128xf32>
    %124 = vector.extract_strided_slice %123 {offsets = [0, 0], sizes = [8, 32], strides = [1, 1]} : vector<8x128xf32> to vector<8x32xf32>
    %125 = vector.extract_strided_slice %123 {offsets = [0, 32], sizes = [8, 32], strides = [1, 1]} : vector<8x128xf32> to vector<8x32xf32>
    %126 = vector.extract_strided_slice %123 {offsets = [0, 64], sizes = [8, 32], strides = [1, 1]} : vector<8x128xf32> to vector<8x32xf32>
    %127 = vector.extract_strided_slice %123 {offsets = [0, 96], sizes = [8, 32], strides = [1, 1]} : vector<8x128xf32> to vector<8x32xf32>
    %128 = arith.mulf %125, %88 : vector<8x32xf32>
    %129 = arith.mulf %124, %126 : vector<8x32xf32>
    %130 = arith.addf %128, %129 : vector<8x32xf32>
    %131 = math.tanh %130 : vector<8x32xf32>
    %132 = arith.mulf %127, %131 : vector<8x32xf32>
    %133 = vector.extract_strided_slice %6 {offsets = [24, 0], sizes = [8, 128], strides = [1, 1]} : vector<64x128xf32> to vector<8x128xf32>
    %c0_62 = arith.constant 0 : index
    %c0_63 = arith.constant 0 : index
    %c0_64 = arith.constant 0 : index
    %134 = vector.load %arg2[%c0_62, %c0_63, %c0_64] : memref<2x32x128xf32, #tpu.memory_space<vmem>>, vector<1x32x128xf32>
    %135 = vector.shape_cast %134 : vector<1x32x128xf32> to vector<32x128xf32>
    %cst_65 = arith.constant dense<0.000000e+00> : vector<8x128xf32>
    %136 = tpu.matmul %110, %135, %cst_65 {dimension_numbers = #tpu.dot_dimension_numbers<[1], [0], [0], [1], [0, 0, 1, 1], [], []>} : vector<8x32xf32>, vector<32x128xf32>, vector<8x128xf32> -> vector<8x128xf32>
    %137 = arith.addf %133, %136 : vector<8x128xf32>
    %c0_66 = arith.constant 0 : index
    %c0_67 = arith.constant 0 : index
    %c0_68 = arith.constant 0 : index
    %138 = vector.load %arg3[%c0_66, %c0_67, %c0_68] : memref<2x8x128xf32, #tpu.memory_space<vmem>>, vector<1x8x128xf32>
    %139 = vector.shape_cast %138 : vector<1x8x128xf32> to vector<8x128xf32>
    %140 = arith.addf %137, %139 : vector<8x128xf32>
    %141 = math.tanh %140 : vector<8x128xf32>
    %142 = arith.mulf %141, %0 : vector<8x128xf32>
    %143 = arith.addf %142, %1 : vector<8x128xf32>
    %144 = vector.extract_strided_slice %143 {offsets = [0, 0], sizes = [8, 32], strides = [1, 1]} : vector<8x128xf32> to vector<8x32xf32>
    %145 = vector.extract_strided_slice %143 {offsets = [0, 32], sizes = [8, 32], strides = [1, 1]} : vector<8x128xf32> to vector<8x32xf32>
    %146 = vector.extract_strided_slice %143 {offsets = [0, 64], sizes = [8, 32], strides = [1, 1]} : vector<8x128xf32> to vector<8x32xf32>
    %147 = vector.extract_strided_slice %143 {offsets = [0, 96], sizes = [8, 32], strides = [1, 1]} : vector<8x128xf32> to vector<8x32xf32>
    %148 = arith.mulf %145, %108 : vector<8x32xf32>
    %149 = arith.mulf %144, %146 : vector<8x32xf32>
    %150 = arith.addf %148, %149 : vector<8x32xf32>
    %151 = math.tanh %150 : vector<8x32xf32>
    %152 = arith.mulf %147, %151 : vector<8x32xf32>
    %c1_69 = arith.constant 1 : index
    %c0_70 = arith.constant 0 : index
    %c0_71 = arith.constant 0 : index
    %153 = vector.load %arg1[%c1_69, %c0_70, %c0_71] : memref<2x32x128xf32, #tpu.memory_space<vmem>>, vector<1x32x128xf32>
    %154 = vector.shape_cast %153 : vector<1x32x128xf32> to vector<32x128xf32>
    %cst_72 = arith.constant dense<0.000000e+00> : vector<8x128xf32>
    %155 = tpu.matmul %152, %154, %cst_72 {dimension_numbers = #tpu.dot_dimension_numbers<[1], [0], [0], [1], [0, 0, 1, 1], [], []>} : vector<8x32xf32>, vector<32x128xf32>, vector<8x128xf32> -> vector<8x128xf32>
    %c1_73 = arith.constant 1 : index
    %c0_74 = arith.constant 0 : index
    %c0_75 = arith.constant 0 : index
    %156 = vector.load %arg2[%c1_73, %c0_74, %c0_75] : memref<2x32x128xf32, #tpu.memory_space<vmem>>, vector<1x32x128xf32>
    %157 = vector.shape_cast %156 : vector<1x32x128xf32> to vector<32x128xf32>
    %cst_76 = arith.constant dense<0.000000e+00> : vector<8x128xf32>
    %158 = tpu.matmul %132, %157, %cst_76 {dimension_numbers = #tpu.dot_dimension_numbers<[1], [0], [0], [1], [0, 0, 1, 1], [], []>} : vector<8x32xf32>, vector<32x128xf32>, vector<8x128xf32> -> vector<8x128xf32>
    %159 = arith.addf %155, %158 : vector<8x128xf32>
    %c1_77 = arith.constant 1 : index
    %c0_78 = arith.constant 0 : index
    %c0_79 = arith.constant 0 : index
    %160 = vector.load %arg3[%c1_77, %c0_78, %c0_79] : memref<2x8x128xf32, #tpu.memory_space<vmem>>, vector<1x8x128xf32>
    %161 = vector.shape_cast %160 : vector<1x8x128xf32> to vector<8x128xf32>
    %162 = arith.addf %159, %161 : vector<8x128xf32>
    %163 = math.tanh %162 : vector<8x128xf32>
    %164 = arith.mulf %163, %0 : vector<8x128xf32>
    %165 = arith.addf %164, %1 : vector<8x128xf32>
    %166 = vector.extract_strided_slice %165 {offsets = [0, 0], sizes = [8, 32], strides = [1, 1]} : vector<8x128xf32> to vector<8x32xf32>
    %167 = vector.extract_strided_slice %165 {offsets = [0, 32], sizes = [8, 32], strides = [1, 1]} : vector<8x128xf32> to vector<8x32xf32>
    %168 = vector.extract_strided_slice %165 {offsets = [0, 64], sizes = [8, 32], strides = [1, 1]} : vector<8x128xf32> to vector<8x32xf32>
    %169 = vector.extract_strided_slice %165 {offsets = [0, 96], sizes = [8, 32], strides = [1, 1]} : vector<8x128xf32> to vector<8x32xf32>
    %170 = arith.mulf %167, %130 : vector<8x32xf32>
    %171 = arith.mulf %166, %168 : vector<8x32xf32>
    %172 = arith.addf %170, %171 : vector<8x32xf32>
    %173 = math.tanh %172 : vector<8x32xf32>
    %174 = arith.mulf %169, %173 : vector<8x32xf32>
    %175 = vector.extract_strided_slice %6 {offsets = [32, 0], sizes = [8, 128], strides = [1, 1]} : vector<64x128xf32> to vector<8x128xf32>
    %c0_80 = arith.constant 0 : index
    %c0_81 = arith.constant 0 : index
    %c0_82 = arith.constant 0 : index
    %176 = vector.load %arg2[%c0_80, %c0_81, %c0_82] : memref<2x32x128xf32, #tpu.memory_space<vmem>>, vector<1x32x128xf32>
    %177 = vector.shape_cast %176 : vector<1x32x128xf32> to vector<32x128xf32>
    %cst_83 = arith.constant dense<0.000000e+00> : vector<8x128xf32>
    %178 = tpu.matmul %152, %177, %cst_83 {dimension_numbers = #tpu.dot_dimension_numbers<[1], [0], [0], [1], [0, 0, 1, 1], [], []>} : vector<8x32xf32>, vector<32x128xf32>, vector<8x128xf32> -> vector<8x128xf32>
    %179 = arith.addf %175, %178 : vector<8x128xf32>
    %c0_84 = arith.constant 0 : index
    %c0_85 = arith.constant 0 : index
    %c0_86 = arith.constant 0 : index
    %180 = vector.load %arg3[%c0_84, %c0_85, %c0_86] : memref<2x8x128xf32, #tpu.memory_space<vmem>>, vector<1x8x128xf32>
    %181 = vector.shape_cast %180 : vector<1x8x128xf32> to vector<8x128xf32>
    %182 = arith.addf %179, %181 : vector<8x128xf32>
    %183 = math.tanh %182 : vector<8x128xf32>
    %184 = arith.mulf %183, %0 : vector<8x128xf32>
    %185 = arith.addf %184, %1 : vector<8x128xf32>
    %186 = vector.extract_strided_slice %185 {offsets = [0, 0], sizes = [8, 32], strides = [1, 1]} : vector<8x128xf32> to vector<8x32xf32>
    %187 = vector.extract_strided_slice %185 {offsets = [0, 32], sizes = [8, 32], strides = [1, 1]} : vector<8x128xf32> to vector<8x32xf32>
    %188 = vector.extract_strided_slice %185 {offsets = [0, 64], sizes = [8, 32], strides = [1, 1]} : vector<8x128xf32> to vector<8x32xf32>
    %189 = vector.extract_strided_slice %185 {offsets = [0, 96], sizes = [8, 32], strides = [1, 1]} : vector<8x128xf32> to vector<8x32xf32>
    %190 = arith.mulf %187, %150 : vector<8x32xf32>
    %191 = arith.mulf %186, %188 : vector<8x32xf32>
    %192 = arith.addf %190, %191 : vector<8x32xf32>
    %193 = math.tanh %192 : vector<8x32xf32>
    %194 = arith.mulf %189, %193 : vector<8x32xf32>
    %c1_87 = arith.constant 1 : index
    %c0_88 = arith.constant 0 : index
    %c0_89 = arith.constant 0 : index
    %195 = vector.load %arg1[%c1_87, %c0_88, %c0_89] : memref<2x32x128xf32, #tpu.memory_space<vmem>>, vector<1x32x128xf32>
    %196 = vector.shape_cast %195 : vector<1x32x128xf32> to vector<32x128xf32>
    %cst_90 = arith.constant dense<0.000000e+00> : vector<8x128xf32>
    %197 = tpu.matmul %194, %196, %cst_90 {dimension_numbers = #tpu.dot_dimension_numbers<[1], [0], [0], [1], [0, 0, 1, 1], [], []>} : vector<8x32xf32>, vector<32x128xf32>, vector<8x128xf32> -> vector<8x128xf32>
    %c1_91 = arith.constant 1 : index
    %c0_92 = arith.constant 0 : index
    %c0_93 = arith.constant 0 : index
    %198 = vector.load %arg2[%c1_91, %c0_92, %c0_93] : memref<2x32x128xf32, #tpu.memory_space<vmem>>, vector<1x32x128xf32>
    %199 = vector.shape_cast %198 : vector<1x32x128xf32> to vector<32x128xf32>
    %cst_94 = arith.constant dense<0.000000e+00> : vector<8x128xf32>
    %200 = tpu.matmul %174, %199, %cst_94 {dimension_numbers = #tpu.dot_dimension_numbers<[1], [0], [0], [1], [0, 0, 1, 1], [], []>} : vector<8x32xf32>, vector<32x128xf32>, vector<8x128xf32> -> vector<8x128xf32>
    %201 = arith.addf %197, %200 : vector<8x128xf32>
    %c1_95 = arith.constant 1 : index
    %c0_96 = arith.constant 0 : index
    %c0_97 = arith.constant 0 : index
    %202 = vector.load %arg3[%c1_95, %c0_96, %c0_97] : memref<2x8x128xf32, #tpu.memory_space<vmem>>, vector<1x8x128xf32>
    %203 = vector.shape_cast %202 : vector<1x8x128xf32> to vector<8x128xf32>
    %204 = arith.addf %201, %203 : vector<8x128xf32>
    %205 = math.tanh %204 : vector<8x128xf32>
    %206 = arith.mulf %205, %0 : vector<8x128xf32>
    %207 = arith.addf %206, %1 : vector<8x128xf32>
    %208 = vector.extract_strided_slice %207 {offsets = [0, 0], sizes = [8, 32], strides = [1, 1]} : vector<8x128xf32> to vector<8x32xf32>
    %209 = vector.extract_strided_slice %207 {offsets = [0, 32], sizes = [8, 32], strides = [1, 1]} : vector<8x128xf32> to vector<8x32xf32>
    %210 = vector.extract_strided_slice %207 {offsets = [0, 64], sizes = [8, 32], strides = [1, 1]} : vector<8x128xf32> to vector<8x32xf32>
    %211 = vector.extract_strided_slice %207 {offsets = [0, 96], sizes = [8, 32], strides = [1, 1]} : vector<8x128xf32> to vector<8x32xf32>
    %212 = arith.mulf %209, %172 : vector<8x32xf32>
    %213 = arith.mulf %208, %210 : vector<8x32xf32>
    %214 = arith.addf %212, %213 : vector<8x32xf32>
    %215 = math.tanh %214 : vector<8x32xf32>
    %216 = arith.mulf %211, %215 : vector<8x32xf32>
    %217 = vector.extract_strided_slice %6 {offsets = [40, 0], sizes = [8, 128], strides = [1, 1]} : vector<64x128xf32> to vector<8x128xf32>
    %c0_98 = arith.constant 0 : index
    %c0_99 = arith.constant 0 : index
    %c0_100 = arith.constant 0 : index
    %218 = vector.load %arg2[%c0_98, %c0_99, %c0_100] : memref<2x32x128xf32, #tpu.memory_space<vmem>>, vector<1x32x128xf32>
    %219 = vector.shape_cast %218 : vector<1x32x128xf32> to vector<32x128xf32>
    %cst_101 = arith.constant dense<0.000000e+00> : vector<8x128xf32>
    %220 = tpu.matmul %194, %219, %cst_101 {dimension_numbers = #tpu.dot_dimension_numbers<[1], [0], [0], [1], [0, 0, 1, 1], [], []>} : vector<8x32xf32>, vector<32x128xf32>, vector<8x128xf32> -> vector<8x128xf32>
    %221 = arith.addf %217, %220 : vector<8x128xf32>
    %c0_102 = arith.constant 0 : index
    %c0_103 = arith.constant 0 : index
    %c0_104 = arith.constant 0 : index
    %222 = vector.load %arg3[%c0_102, %c0_103, %c0_104] : memref<2x8x128xf32, #tpu.memory_space<vmem>>, vector<1x8x128xf32>
    %223 = vector.shape_cast %222 : vector<1x8x128xf32> to vector<8x128xf32>
    %224 = arith.addf %221, %223 : vector<8x128xf32>
    %225 = math.tanh %224 : vector<8x128xf32>
    %226 = arith.mulf %225, %0 : vector<8x128xf32>
    %227 = arith.addf %226, %1 : vector<8x128xf32>
    %228 = vector.extract_strided_slice %227 {offsets = [0, 0], sizes = [8, 32], strides = [1, 1]} : vector<8x128xf32> to vector<8x32xf32>
    %229 = vector.extract_strided_slice %227 {offsets = [0, 32], sizes = [8, 32], strides = [1, 1]} : vector<8x128xf32> to vector<8x32xf32>
    %230 = vector.extract_strided_slice %227 {offsets = [0, 64], sizes = [8, 32], strides = [1, 1]} : vector<8x128xf32> to vector<8x32xf32>
    %231 = vector.extract_strided_slice %227 {offsets = [0, 96], sizes = [8, 32], strides = [1, 1]} : vector<8x128xf32> to vector<8x32xf32>
    %232 = arith.mulf %229, %192 : vector<8x32xf32>
    %233 = arith.mulf %228, %230 : vector<8x32xf32>
    %234 = arith.addf %232, %233 : vector<8x32xf32>
    %235 = math.tanh %234 : vector<8x32xf32>
    %236 = arith.mulf %231, %235 : vector<8x32xf32>
    %c1_105 = arith.constant 1 : index
    %c0_106 = arith.constant 0 : index
    %c0_107 = arith.constant 0 : index
    %237 = vector.load %arg1[%c1_105, %c0_106, %c0_107] : memref<2x32x128xf32, #tpu.memory_space<vmem>>, vector<1x32x128xf32>
    %238 = vector.shape_cast %237 : vector<1x32x128xf32> to vector<32x128xf32>
    %cst_108 = arith.constant dense<0.000000e+00> : vector<8x128xf32>
    %239 = tpu.matmul %236, %238, %cst_108 {dimension_numbers = #tpu.dot_dimension_numbers<[1], [0], [0], [1], [0, 0, 1, 1], [], []>} : vector<8x32xf32>, vector<32x128xf32>, vector<8x128xf32> -> vector<8x128xf32>
    %c1_109 = arith.constant 1 : index
    %c0_110 = arith.constant 0 : index
    %c0_111 = arith.constant 0 : index
    %240 = vector.load %arg2[%c1_109, %c0_110, %c0_111] : memref<2x32x128xf32, #tpu.memory_space<vmem>>, vector<1x32x128xf32>
    %241 = vector.shape_cast %240 : vector<1x32x128xf32> to vector<32x128xf32>
    %cst_112 = arith.constant dense<0.000000e+00> : vector<8x128xf32>
    %242 = tpu.matmul %216, %241, %cst_112 {dimension_numbers = #tpu.dot_dimension_numbers<[1], [0], [0], [1], [0, 0, 1, 1], [], []>} : vector<8x32xf32>, vector<32x128xf32>, vector<8x128xf32> -> vector<8x128xf32>
    %243 = arith.addf %239, %242 : vector<8x128xf32>
    %c1_113 = arith.constant 1 : index
    %c0_114 = arith.constant 0 : index
    %c0_115 = arith.constant 0 : index
    %244 = vector.load %arg3[%c1_113, %c0_114, %c0_115] : memref<2x8x128xf32, #tpu.memory_space<vmem>>, vector<1x8x128xf32>
    %245 = vector.shape_cast %244 : vector<1x8x128xf32> to vector<8x128xf32>
    %246 = arith.addf %243, %245 : vector<8x128xf32>
    %247 = math.tanh %246 : vector<8x128xf32>
    %248 = arith.mulf %247, %0 : vector<8x128xf32>
    %249 = arith.addf %248, %1 : vector<8x128xf32>
    %250 = vector.extract_strided_slice %249 {offsets = [0, 0], sizes = [8, 32], strides = [1, 1]} : vector<8x128xf32> to vector<8x32xf32>
    %251 = vector.extract_strided_slice %249 {offsets = [0, 32], sizes = [8, 32], strides = [1, 1]} : vector<8x128xf32> to vector<8x32xf32>
    %252 = vector.extract_strided_slice %249 {offsets = [0, 64], sizes = [8, 32], strides = [1, 1]} : vector<8x128xf32> to vector<8x32xf32>
    %253 = vector.extract_strided_slice %249 {offsets = [0, 96], sizes = [8, 32], strides = [1, 1]} : vector<8x128xf32> to vector<8x32xf32>
    %254 = arith.mulf %251, %214 : vector<8x32xf32>
    %255 = arith.mulf %250, %252 : vector<8x32xf32>
    %256 = arith.addf %254, %255 : vector<8x32xf32>
    %257 = math.tanh %256 : vector<8x32xf32>
    %258 = arith.mulf %253, %257 : vector<8x32xf32>
    %259 = vector.extract_strided_slice %6 {offsets = [48, 0], sizes = [8, 128], strides = [1, 1]} : vector<64x128xf32> to vector<8x128xf32>
    %c0_116 = arith.constant 0 : index
    %c0_117 = arith.constant 0 : index
    %c0_118 = arith.constant 0 : index
    %260 = vector.load %arg2[%c0_116, %c0_117, %c0_118] : memref<2x32x128xf32, #tpu.memory_space<vmem>>, vector<1x32x128xf32>
    %261 = vector.shape_cast %260 : vector<1x32x128xf32> to vector<32x128xf32>
    %cst_119 = arith.constant dense<0.000000e+00> : vector<8x128xf32>
    %262 = tpu.matmul %236, %261, %cst_119 {dimension_numbers = #tpu.dot_dimension_numbers<[1], [0], [0], [1], [0, 0, 1, 1], [], []>} : vector<8x32xf32>, vector<32x128xf32>, vector<8x128xf32> -> vector<8x128xf32>
    %263 = arith.addf %259, %262 : vector<8x128xf32>
    %c0_120 = arith.constant 0 : index
    %c0_121 = arith.constant 0 : index
    %c0_122 = arith.constant 0 : index
    %264 = vector.load %arg3[%c0_120, %c0_121, %c0_122] : memref<2x8x128xf32, #tpu.memory_space<vmem>>, vector<1x8x128xf32>
    %265 = vector.shape_cast %264 : vector<1x8x128xf32> to vector<8x128xf32>
    %266 = arith.addf %263, %265 : vector<8x128xf32>
    %267 = math.tanh %266 : vector<8x128xf32>
    %268 = arith.mulf %267, %0 : vector<8x128xf32>
    %269 = arith.addf %268, %1 : vector<8x128xf32>
    %270 = vector.extract_strided_slice %269 {offsets = [0, 0], sizes = [8, 32], strides = [1, 1]} : vector<8x128xf32> to vector<8x32xf32>
    %271 = vector.extract_strided_slice %269 {offsets = [0, 32], sizes = [8, 32], strides = [1, 1]} : vector<8x128xf32> to vector<8x32xf32>
    %272 = vector.extract_strided_slice %269 {offsets = [0, 64], sizes = [8, 32], strides = [1, 1]} : vector<8x128xf32> to vector<8x32xf32>
    %273 = vector.extract_strided_slice %269 {offsets = [0, 96], sizes = [8, 32], strides = [1, 1]} : vector<8x128xf32> to vector<8x32xf32>
    %274 = arith.mulf %271, %234 : vector<8x32xf32>
    %275 = arith.mulf %270, %272 : vector<8x32xf32>
    %276 = arith.addf %274, %275 : vector<8x32xf32>
    %277 = math.tanh %276 : vector<8x32xf32>
    %278 = arith.mulf %273, %277 : vector<8x32xf32>
    %c1_123 = arith.constant 1 : index
    %c0_124 = arith.constant 0 : index
    %c0_125 = arith.constant 0 : index
    %279 = vector.load %arg1[%c1_123, %c0_124, %c0_125] : memref<2x32x128xf32, #tpu.memory_space<vmem>>, vector<1x32x128xf32>
    %280 = vector.shape_cast %279 : vector<1x32x128xf32> to vector<32x128xf32>
    %cst_126 = arith.constant dense<0.000000e+00> : vector<8x128xf32>
    %281 = tpu.matmul %278, %280, %cst_126 {dimension_numbers = #tpu.dot_dimension_numbers<[1], [0], [0], [1], [0, 0, 1, 1], [], []>} : vector<8x32xf32>, vector<32x128xf32>, vector<8x128xf32> -> vector<8x128xf32>
    %c1_127 = arith.constant 1 : index
    %c0_128 = arith.constant 0 : index
    %c0_129 = arith.constant 0 : index
    %282 = vector.load %arg2[%c1_127, %c0_128, %c0_129] : memref<2x32x128xf32, #tpu.memory_space<vmem>>, vector<1x32x128xf32>
    %283 = vector.shape_cast %282 : vector<1x32x128xf32> to vector<32x128xf32>
    %cst_130 = arith.constant dense<0.000000e+00> : vector<8x128xf32>
    %284 = tpu.matmul %258, %283, %cst_130 {dimension_numbers = #tpu.dot_dimension_numbers<[1], [0], [0], [1], [0, 0, 1, 1], [], []>} : vector<8x32xf32>, vector<32x128xf32>, vector<8x128xf32> -> vector<8x128xf32>
    %285 = arith.addf %281, %284 : vector<8x128xf32>
    %c1_131 = arith.constant 1 : index
    %c0_132 = arith.constant 0 : index
    %c0_133 = arith.constant 0 : index
    %286 = vector.load %arg3[%c1_131, %c0_132, %c0_133] : memref<2x8x128xf32, #tpu.memory_space<vmem>>, vector<1x8x128xf32>
    %287 = vector.shape_cast %286 : vector<1x8x128xf32> to vector<8x128xf32>
    %288 = arith.addf %285, %287 : vector<8x128xf32>
    %289 = math.tanh %288 : vector<8x128xf32>
    %290 = arith.mulf %289, %0 : vector<8x128xf32>
    %291 = arith.addf %290, %1 : vector<8x128xf32>
    %292 = vector.extract_strided_slice %291 {offsets = [0, 0], sizes = [8, 32], strides = [1, 1]} : vector<8x128xf32> to vector<8x32xf32>
    %293 = vector.extract_strided_slice %291 {offsets = [0, 32], sizes = [8, 32], strides = [1, 1]} : vector<8x128xf32> to vector<8x32xf32>
    %294 = vector.extract_strided_slice %291 {offsets = [0, 64], sizes = [8, 32], strides = [1, 1]} : vector<8x128xf32> to vector<8x32xf32>
    %295 = vector.extract_strided_slice %291 {offsets = [0, 96], sizes = [8, 32], strides = [1, 1]} : vector<8x128xf32> to vector<8x32xf32>
    %296 = arith.mulf %293, %256 : vector<8x32xf32>
    %297 = arith.mulf %292, %294 : vector<8x32xf32>
    %298 = arith.addf %296, %297 : vector<8x32xf32>
    %299 = math.tanh %298 : vector<8x32xf32>
    %300 = arith.mulf %295, %299 : vector<8x32xf32>
    %301 = vector.extract_strided_slice %6 {offsets = [56, 0], sizes = [8, 128], strides = [1, 1]} : vector<64x128xf32> to vector<8x128xf32>
    %c0_134 = arith.constant 0 : index
    %c0_135 = arith.constant 0 : index
    %c0_136 = arith.constant 0 : index
    %302 = vector.load %arg2[%c0_134, %c0_135, %c0_136] : memref<2x32x128xf32, #tpu.memory_space<vmem>>, vector<1x32x128xf32>
    %303 = vector.shape_cast %302 : vector<1x32x128xf32> to vector<32x128xf32>
    %cst_137 = arith.constant dense<0.000000e+00> : vector<8x128xf32>
    %304 = tpu.matmul %278, %303, %cst_137 {dimension_numbers = #tpu.dot_dimension_numbers<[1], [0], [0], [1], [0, 0, 1, 1], [], []>} : vector<8x32xf32>, vector<32x128xf32>, vector<8x128xf32> -> vector<8x128xf32>
    %305 = arith.addf %301, %304 : vector<8x128xf32>
    %c0_138 = arith.constant 0 : index
    %c0_139 = arith.constant 0 : index
    %c0_140 = arith.constant 0 : index
    %306 = vector.load %arg3[%c0_138, %c0_139, %c0_140] : memref<2x8x128xf32, #tpu.memory_space<vmem>>, vector<1x8x128xf32>
    %307 = vector.shape_cast %306 : vector<1x8x128xf32> to vector<8x128xf32>
    %308 = arith.addf %305, %307 : vector<8x128xf32>
    %309 = math.tanh %308 : vector<8x128xf32>
    %310 = arith.mulf %309, %0 : vector<8x128xf32>
    %311 = arith.addf %310, %1 : vector<8x128xf32>
    %312 = vector.extract_strided_slice %311 {offsets = [0, 0], sizes = [8, 32], strides = [1, 1]} : vector<8x128xf32> to vector<8x32xf32>
    %313 = vector.extract_strided_slice %311 {offsets = [0, 32], sizes = [8, 32], strides = [1, 1]} : vector<8x128xf32> to vector<8x32xf32>
    %314 = vector.extract_strided_slice %311 {offsets = [0, 64], sizes = [8, 32], strides = [1, 1]} : vector<8x128xf32> to vector<8x32xf32>
    %315 = vector.extract_strided_slice %311 {offsets = [0, 96], sizes = [8, 32], strides = [1, 1]} : vector<8x128xf32> to vector<8x32xf32>
    %316 = arith.mulf %313, %276 : vector<8x32xf32>
    %317 = arith.mulf %312, %314 : vector<8x32xf32>
    %318 = arith.addf %316, %317 : vector<8x32xf32>
    %319 = math.tanh %318 : vector<8x32xf32>
    %320 = arith.mulf %315, %319 : vector<8x32xf32>
    %c1_141 = arith.constant 1 : index
    %c0_142 = arith.constant 0 : index
    %c0_143 = arith.constant 0 : index
    %321 = vector.load %arg1[%c1_141, %c0_142, %c0_143] : memref<2x32x128xf32, #tpu.memory_space<vmem>>, vector<1x32x128xf32>
    %322 = vector.shape_cast %321 : vector<1x32x128xf32> to vector<32x128xf32>
    %cst_144 = arith.constant dense<0.000000e+00> : vector<8x128xf32>
    %323 = tpu.matmul %320, %322, %cst_144 {dimension_numbers = #tpu.dot_dimension_numbers<[1], [0], [0], [1], [0, 0, 1, 1], [], []>} : vector<8x32xf32>, vector<32x128xf32>, vector<8x128xf32> -> vector<8x128xf32>
    %c1_145 = arith.constant 1 : index
    %c0_146 = arith.constant 0 : index
    %c0_147 = arith.constant 0 : index
    %324 = vector.load %arg2[%c1_145, %c0_146, %c0_147] : memref<2x32x128xf32, #tpu.memory_space<vmem>>, vector<1x32x128xf32>
    %325 = vector.shape_cast %324 : vector<1x32x128xf32> to vector<32x128xf32>
    %cst_148 = arith.constant dense<0.000000e+00> : vector<8x128xf32>
    %326 = tpu.matmul %300, %325, %cst_148 {dimension_numbers = #tpu.dot_dimension_numbers<[1], [0], [0], [1], [0, 0, 1, 1], [], []>} : vector<8x32xf32>, vector<32x128xf32>, vector<8x128xf32> -> vector<8x128xf32>
    %327 = arith.addf %323, %326 : vector<8x128xf32>
    %c1_149 = arith.constant 1 : index
    %c0_150 = arith.constant 0 : index
    %c0_151 = arith.constant 0 : index
    %328 = vector.load %arg3[%c1_149, %c0_150, %c0_151] : memref<2x8x128xf32, #tpu.memory_space<vmem>>, vector<1x8x128xf32>
    %329 = vector.shape_cast %328 : vector<1x8x128xf32> to vector<8x128xf32>
    %330 = arith.addf %327, %329 : vector<8x128xf32>
    %331 = math.tanh %330 : vector<8x128xf32>
    %332 = arith.mulf %331, %0 : vector<8x128xf32>
    %333 = arith.addf %332, %1 : vector<8x128xf32>
    %334 = vector.extract_strided_slice %333 {offsets = [0, 0], sizes = [8, 32], strides = [1, 1]} : vector<8x128xf32> to vector<8x32xf32>
    %335 = vector.extract_strided_slice %333 {offsets = [0, 32], sizes = [8, 32], strides = [1, 1]} : vector<8x128xf32> to vector<8x32xf32>
    %336 = vector.extract_strided_slice %333 {offsets = [0, 64], sizes = [8, 32], strides = [1, 1]} : vector<8x128xf32> to vector<8x32xf32>
    %337 = vector.extract_strided_slice %333 {offsets = [0, 96], sizes = [8, 32], strides = [1, 1]} : vector<8x128xf32> to vector<8x32xf32>
    %338 = arith.mulf %335, %298 : vector<8x32xf32>
    %339 = arith.mulf %334, %336 : vector<8x32xf32>
    %340 = arith.addf %338, %339 : vector<8x32xf32>
    %341 = math.tanh %340 : vector<8x32xf32>
    %342 = arith.mulf %337, %341 : vector<8x32xf32>
    %343 = vector.extract_strided_slice %3 {offsets = [56, 0], sizes = [8, 1], strides = [1, 1]} : vector<64x32xf32> to vector<8x1xf32>
    %c0_152 = arith.constant 0 : index
    %c0_153 = arith.constant 0 : index
    %344 = vector.load %arg7[%c0_152, %c0_153] : memref<8x128xf32, #tpu.memory_space<vmem>>, vector<8x128xf32>
    %c0_154 = arith.constant 0 : index
    %c0_155 = arith.constant 0 : index
    %345 = vector.load %arg8[%c0_154, %c0_155] : memref<8x128xf32, #tpu.memory_space<vmem>>, vector<8x128xf32>
    %c0_156 = arith.constant 0 : index
    %c0_157 = arith.constant 0 : index
    %346 = vector.load %arg11[%c0_156, %c0_157] : memref<8x32xf32, #tpu.memory_space<vmem>>, vector<8x32xf32>
    %c0_158 = arith.constant 0 : index
    %c0_159 = arith.constant 0 : index
    %347 = vector.load %arg12[%c0_158, %c0_159] : memref<8x1xf32, #tpu.memory_space<vmem>>, vector<8x1xf32>
    %348 = vector.broadcast %343 : vector<8x1xf32> to vector<8x128xf32>
    %349 = arith.mulf %348, %344 : vector<8x128xf32>
    %350 = arith.addf %349, %345 : vector<8x128xf32>
    %c0_160 = arith.constant 0 : index
    %c0_161 = arith.constant 0 : index
    %c0_162 = arith.constant 0 : index
    %351 = vector.load %arg5[%c0_160, %c0_161, %c0_162] : memref<2x32x128xf32, #tpu.memory_space<vmem>>, vector<1x32x128xf32>
    %352 = vector.shape_cast %351 : vector<1x32x128xf32> to vector<32x128xf32>
    %cst_163 = arith.constant dense<0.000000e+00> : vector<8x128xf32>
    %353 = tpu.matmul %320, %352, %cst_163 {dimension_numbers = #tpu.dot_dimension_numbers<[1], [0], [0], [1], [0, 0, 1, 1], [], []>} : vector<8x32xf32>, vector<32x128xf32>, vector<8x128xf32> -> vector<8x128xf32>
    %354 = arith.addf %350, %353 : vector<8x128xf32>
    %c0_164 = arith.constant 0 : index
    %c0_165 = arith.constant 0 : index
    %c0_166 = arith.constant 0 : index
    %355 = vector.load %arg6[%c0_164, %c0_165, %c0_166] : memref<2x8x128xf32, #tpu.memory_space<vmem>>, vector<1x8x128xf32>
    %356 = vector.shape_cast %355 : vector<1x8x128xf32> to vector<8x128xf32>
    %357 = arith.addf %354, %356 : vector<8x128xf32>
    %358 = math.tanh %357 : vector<8x128xf32>
    %359 = arith.mulf %358, %0 : vector<8x128xf32>
    %360 = arith.addf %359, %1 : vector<8x128xf32>
    %361 = vector.extract_strided_slice %360 {offsets = [0, 0], sizes = [8, 32], strides = [1, 1]} : vector<8x128xf32> to vector<8x32xf32>
    %362 = vector.extract_strided_slice %360 {offsets = [0, 32], sizes = [8, 32], strides = [1, 1]} : vector<8x128xf32> to vector<8x32xf32>
    %363 = vector.extract_strided_slice %360 {offsets = [0, 64], sizes = [8, 32], strides = [1, 1]} : vector<8x128xf32> to vector<8x32xf32>
    %364 = vector.extract_strided_slice %360 {offsets = [0, 96], sizes = [8, 32], strides = [1, 1]} : vector<8x128xf32> to vector<8x32xf32>
    %365 = arith.mulf %362, %318 : vector<8x32xf32>
    %366 = arith.mulf %361, %363 : vector<8x32xf32>
    %367 = arith.addf %365, %366 : vector<8x32xf32>
    %368 = math.tanh %367 : vector<8x32xf32>
    %369 = arith.mulf %364, %368 : vector<8x32xf32>
    %c1_167 = arith.constant 1 : index
    %c0_168 = arith.constant 0 : index
    %c0_169 = arith.constant 0 : index
    %370 = vector.load %arg4[%c1_167, %c0_168, %c0_169] : memref<2x32x128xf32, #tpu.memory_space<vmem>>, vector<1x32x128xf32>
    %371 = vector.shape_cast %370 : vector<1x32x128xf32> to vector<32x128xf32>
    %cst_170 = arith.constant dense<0.000000e+00> : vector<8x128xf32>
    %372 = tpu.matmul %369, %371, %cst_170 {dimension_numbers = #tpu.dot_dimension_numbers<[1], [0], [0], [1], [0, 0, 1, 1], [], []>} : vector<8x32xf32>, vector<32x128xf32>, vector<8x128xf32> -> vector<8x128xf32>
    %c1_171 = arith.constant 1 : index
    %c0_172 = arith.constant 0 : index
    %c0_173 = arith.constant 0 : index
    %373 = vector.load %arg5[%c1_171, %c0_172, %c0_173] : memref<2x32x128xf32, #tpu.memory_space<vmem>>, vector<1x32x128xf32>
    %374 = vector.shape_cast %373 : vector<1x32x128xf32> to vector<32x128xf32>
    %cst_174 = arith.constant dense<0.000000e+00> : vector<8x128xf32>
    %375 = tpu.matmul %342, %374, %cst_174 {dimension_numbers = #tpu.dot_dimension_numbers<[1], [0], [0], [1], [0, 0, 1, 1], [], []>} : vector<8x32xf32>, vector<32x128xf32>, vector<8x128xf32> -> vector<8x128xf32>
    %376 = arith.addf %372, %375 : vector<8x128xf32>
    %c1_175 = arith.constant 1 : index
    %c0_176 = arith.constant 0 : index
    %c0_177 = arith.constant 0 : index
    %377 = vector.load %arg6[%c1_175, %c0_176, %c0_177] : memref<2x8x128xf32, #tpu.memory_space<vmem>>, vector<1x8x128xf32>
    %378 = vector.shape_cast %377 : vector<1x8x128xf32> to vector<8x128xf32>
    %379 = arith.addf %376, %378 : vector<8x128xf32>
    %380 = math.tanh %379 : vector<8x128xf32>
    %381 = arith.mulf %380, %0 : vector<8x128xf32>
    %382 = arith.addf %381, %1 : vector<8x128xf32>
    %383 = vector.extract_strided_slice %382 {offsets = [0, 0], sizes = [8, 32], strides = [1, 1]} : vector<8x128xf32> to vector<8x32xf32>
    %384 = vector.extract_strided_slice %382 {offsets = [0, 32], sizes = [8, 32], strides = [1, 1]} : vector<8x128xf32> to vector<8x32xf32>
    %385 = vector.extract_strided_slice %382 {offsets = [0, 64], sizes = [8, 32], strides = [1, 1]} : vector<8x128xf32> to vector<8x32xf32>
    %386 = vector.extract_strided_slice %382 {offsets = [0, 96], sizes = [8, 32], strides = [1, 1]} : vector<8x128xf32> to vector<8x32xf32>
    %387 = arith.mulf %384, %340 : vector<8x32xf32>
    %388 = arith.mulf %383, %385 : vector<8x32xf32>
    %389 = arith.addf %387, %388 : vector<8x32xf32>
    %390 = math.tanh %389 : vector<8x32xf32>
    %391 = arith.mulf %386, %390 : vector<8x32xf32>
    %392 = arith.mulf %391, %346 : vector<8x32xf32>
    %cst_178 = arith.constant dense<0.000000e+00> : vector<8xf32>
    %393 = vector.multi_reduction <add>, %392, %cst_178 [1] : vector<8x32xf32> to vector<8xf32>
    %394 = vector.shape_cast %393 : vector<8xf32> to vector<8x1xf32>
    %395 = arith.addf %394, %347 : vector<8x1xf32>
    %c0_179 = arith.constant 0 : index
    %c0_180 = arith.constant 0 : index
    %396 = vector.load %arg13[%c0_179, %c0_180] : memref<8x4xf32, #tpu.memory_space<vmem>>, vector<8x1xf32>
    tpu.vector_store %arg13[%c0_179, %c0_180], %395 {strides = array<i32>} : memref<8x4xf32, #tpu.memory_space<vmem>>, vector<8x1xf32>,
    %397 = vector.broadcast %395 : vector<8x1xf32> to vector<8x128xf32>
    %398 = arith.mulf %397, %344 : vector<8x128xf32>
    %399 = arith.addf %398, %345 : vector<8x128xf32>
    %c0_181 = arith.constant 0 : index
    %c0_182 = arith.constant 0 : index
    %c0_183 = arith.constant 0 : index
    %400 = vector.load %arg5[%c0_181, %c0_182, %c0_183] : memref<2x32x128xf32, #tpu.memory_space<vmem>>, vector<1x32x128xf32>
    %401 = vector.shape_cast %400 : vector<1x32x128xf32> to vector<32x128xf32>
    %cst_184 = arith.constant dense<0.000000e+00> : vector<8x128xf32>
    %402 = tpu.matmul %369, %401, %cst_184 {dimension_numbers = #tpu.dot_dimension_numbers<[1], [0], [0], [1], [0, 0, 1, 1], [], []>} : vector<8x32xf32>, vector<32x128xf32>, vector<8x128xf32> -> vector<8x128xf32>
    %403 = arith.addf %399, %402 : vector<8x128xf32>
    %c0_185 = arith.constant 0 : index
    %c0_186 = arith.constant 0 : index
    %c0_187 = arith.constant 0 : index
    %404 = vector.load %arg6[%c0_185, %c0_186, %c0_187] : memref<2x8x128xf32, #tpu.memory_space<vmem>>, vector<1x8x128xf32>
    %405 = vector.shape_cast %404 : vector<1x8x128xf32> to vector<8x128xf32>
    %406 = arith.addf %403, %405 : vector<8x128xf32>
    %407 = math.tanh %406 : vector<8x128xf32>
    %408 = arith.mulf %407, %0 : vector<8x128xf32>
    %409 = arith.addf %408, %1 : vector<8x128xf32>
    %410 = vector.extract_strided_slice %409 {offsets = [0, 0], sizes = [8, 32], strides = [1, 1]} : vector<8x128xf32> to vector<8x32xf32>
    %411 = vector.extract_strided_slice %409 {offsets = [0, 32], sizes = [8, 32], strides = [1, 1]} : vector<8x128xf32> to vector<8x32xf32>
    %412 = vector.extract_strided_slice %409 {offsets = [0, 64], sizes = [8, 32], strides = [1, 1]} : vector<8x128xf32> to vector<8x32xf32>
    %413 = vector.extract_strided_slice %409 {offsets = [0, 96], sizes = [8, 32], strides = [1, 1]} : vector<8x128xf32> to vector<8x32xf32>
    %414 = arith.mulf %411, %367 : vector<8x32xf32>
    %415 = arith.mulf %410, %412 : vector<8x32xf32>
    %416 = arith.addf %414, %415 : vector<8x32xf32>
    %417 = math.tanh %416 : vector<8x32xf32>
    %418 = arith.mulf %413, %417 : vector<8x32xf32>
    %c1_188 = arith.constant 1 : index
    %c0_189 = arith.constant 0 : index
    %c0_190 = arith.constant 0 : index
    %419 = vector.load %arg4[%c1_188, %c0_189, %c0_190] : memref<2x32x128xf32, #tpu.memory_space<vmem>>, vector<1x32x128xf32>
    %420 = vector.shape_cast %419 : vector<1x32x128xf32> to vector<32x128xf32>
    %cst_191 = arith.constant dense<0.000000e+00> : vector<8x128xf32>
    %421 = tpu.matmul %418, %420, %cst_191 {dimension_numbers = #tpu.dot_dimension_numbers<[1], [0], [0], [1], [0, 0, 1, 1], [], []>} : vector<8x32xf32>, vector<32x128xf32>, vector<8x128xf32> -> vector<8x128xf32>
    %c1_192 = arith.constant 1 : index
    %c0_193 = arith.constant 0 : index
    %c0_194 = arith.constant 0 : index
    %422 = vector.load %arg5[%c1_192, %c0_193, %c0_194] : memref<2x32x128xf32, #tpu.memory_space<vmem>>, vector<1x32x128xf32>
    %423 = vector.shape_cast %422 : vector<1x32x128xf32> to vector<32x128xf32>
    %cst_195 = arith.constant dense<0.000000e+00> : vector<8x128xf32>
    %424 = tpu.matmul %391, %423, %cst_195 {dimension_numbers = #tpu.dot_dimension_numbers<[1], [0], [0], [1], [0, 0, 1, 1], [], []>} : vector<8x32xf32>, vector<32x128xf32>, vector<8x128xf32> -> vector<8x128xf32>
    %425 = arith.addf %421, %424 : vector<8x128xf32>
    %c1_196 = arith.constant 1 : index
    %c0_197 = arith.constant 0 : index
    %c0_198 = arith.constant 0 : index
    %426 = vector.load %arg6[%c1_196, %c0_197, %c0_198] : memref<2x8x128xf32, #tpu.memory_space<vmem>>, vector<1x8x128xf32>
    %427 = vector.shape_cast %426 : vector<1x8x128xf32> to vector<8x128xf32>
    %428 = arith.addf %425, %427 : vector<8x128xf32>
    %429 = math.tanh %428 : vector<8x128xf32>
    %430 = arith.mulf %429, %0 : vector<8x128xf32>
    %431 = arith.addf %430, %1 : vector<8x128xf32>
    %432 = vector.extract_strided_slice %431 {offsets = [0, 0], sizes = [8, 32], strides = [1, 1]} : vector<8x128xf32> to vector<8x32xf32>
    %433 = vector.extract_strided_slice %431 {offsets = [0, 32], sizes = [8, 32], strides = [1, 1]} : vector<8x128xf32> to vector<8x32xf32>
    %434 = vector.extract_strided_slice %431 {offsets = [0, 64], sizes = [8, 32], strides = [1, 1]} : vector<8x128xf32> to vector<8x32xf32>
    %435 = vector.extract_strided_slice %431 {offsets = [0, 96], sizes = [8, 32], strides = [1, 1]} : vector<8x128xf32> to vector<8x32xf32>
    %436 = arith.mulf %433, %389 : vector<8x32xf32>
    %437 = arith.mulf %432, %434 : vector<8x32xf32>
    %438 = arith.addf %436, %437 : vector<8x32xf32>
    %439 = math.tanh %438 : vector<8x32xf32>
    %440 = arith.mulf %435, %439 : vector<8x32xf32>
    %441 = arith.mulf %440, %346 : vector<8x32xf32>
    %cst_199 = arith.constant dense<0.000000e+00> : vector<8xf32>
    %442 = vector.multi_reduction <add>, %441, %cst_199 [1] : vector<8x32xf32> to vector<8xf32>
    %443 = vector.shape_cast %442 : vector<8xf32> to vector<8x1xf32>
    %444 = arith.addf %443, %347 : vector<8x1xf32>
    %c0_200 = arith.constant 0 : index
    %c1_201 = arith.constant 1 : index
    %445 = vector.load %arg13[%c0_200, %c1_201] : memref<8x4xf32, #tpu.memory_space<vmem>>, vector<8x1xf32>
    tpu.vector_store %arg13[%c0_200, %c1_201], %444 {strides = array<i32>} : memref<8x4xf32, #tpu.memory_space<vmem>>, vector<8x1xf32>,
    %446 = vector.broadcast %444 : vector<8x1xf32> to vector<8x128xf32>
    %447 = arith.mulf %446, %344 : vector<8x128xf32>
    %448 = arith.addf %447, %345 : vector<8x128xf32>
    %c0_202 = arith.constant 0 : index
    %c0_203 = arith.constant 0 : index
    %c0_204 = arith.constant 0 : index
    %449 = vector.load %arg5[%c0_202, %c0_203, %c0_204] : memref<2x32x128xf32, #tpu.memory_space<vmem>>, vector<1x32x128xf32>
    %450 = vector.shape_cast %449 : vector<1x32x128xf32> to vector<32x128xf32>
    %cst_205 = arith.constant dense<0.000000e+00> : vector<8x128xf32>
    %451 = tpu.matmul %418, %450, %cst_205 {dimension_numbers = #tpu.dot_dimension_numbers<[1], [0], [0], [1], [0, 0, 1, 1], [], []>} : vector<8x32xf32>, vector<32x128xf32>, vector<8x128xf32> -> vector<8x128xf32>
    %452 = arith.addf %448, %451 : vector<8x128xf32>
    %c0_206 = arith.constant 0 : index
    %c0_207 = arith.constant 0 : index
    %c0_208 = arith.constant 0 : index
    %453 = vector.load %arg6[%c0_206, %c0_207, %c0_208] : memref<2x8x128xf32, #tpu.memory_space<vmem>>, vector<1x8x128xf32>
    %454 = vector.shape_cast %453 : vector<1x8x128xf32> to vector<8x128xf32>
    %455 = arith.addf %452, %454 : vector<8x128xf32>
    %456 = math.tanh %455 : vector<8x128xf32>
    %457 = arith.mulf %456, %0 : vector<8x128xf32>
    %458 = arith.addf %457, %1 : vector<8x128xf32>
    %459 = vector.extract_strided_slice %458 {offsets = [0, 0], sizes = [8, 32], strides = [1, 1]} : vector<8x128xf32> to vector<8x32xf32>
    %460 = vector.extract_strided_slice %458 {offsets = [0, 32], sizes = [8, 32], strides = [1, 1]} : vector<8x128xf32> to vector<8x32xf32>
    %461 = vector.extract_strided_slice %458 {offsets = [0, 64], sizes = [8, 32], strides = [1, 1]} : vector<8x128xf32> to vector<8x32xf32>
    %462 = vector.extract_strided_slice %458 {offsets = [0, 96], sizes = [8, 32], strides = [1, 1]} : vector<8x128xf32> to vector<8x32xf32>
    %463 = arith.mulf %460, %416 : vector<8x32xf32>
    %464 = arith.mulf %459, %461 : vector<8x32xf32>
    %465 = arith.addf %463, %464 : vector<8x32xf32>
    %466 = math.tanh %465 : vector<8x32xf32>
    %467 = arith.mulf %462, %466 : vector<8x32xf32>
    %c1_209 = arith.constant 1 : index
    %c0_210 = arith.constant 0 : index
    %c0_211 = arith.constant 0 : index
    %468 = vector.load %arg4[%c1_209, %c0_210, %c0_211] : memref<2x32x128xf32, #tpu.memory_space<vmem>>, vector<1x32x128xf32>
    %469 = vector.shape_cast %468 : vector<1x32x128xf32> to vector<32x128xf32>
    %cst_212 = arith.constant dense<0.000000e+00> : vector<8x128xf32>
    %470 = tpu.matmul %467, %469, %cst_212 {dimension_numbers = #tpu.dot_dimension_numbers<[1], [0], [0], [1], [0, 0, 1, 1], [], []>} : vector<8x32xf32>, vector<32x128xf32>, vector<8x128xf32> -> vector<8x128xf32>
    %c1_213 = arith.constant 1 : index
    %c0_214 = arith.constant 0 : index
    %c0_215 = arith.constant 0 : index
    %471 = vector.load %arg5[%c1_213, %c0_214, %c0_215] : memref<2x32x128xf32, #tpu.memory_space<vmem>>, vector<1x32x128xf32>
    %472 = vector.shape_cast %471 : vector<1x32x128xf32> to vector<32x128xf32>
    %cst_216 = arith.constant dense<0.000000e+00> : vector<8x128xf32>
    %473 = tpu.matmul %440, %472, %cst_216 {dimension_numbers = #tpu.dot_dimension_numbers<[1], [0], [0], [1], [0, 0, 1, 1], [], []>} : vector<8x32xf32>, vector<32x128xf32>, vector<8x128xf32> -> vector<8x128xf32>
    %474 = arith.addf %470, %473 : vector<8x128xf32>
    %c1_217 = arith.constant 1 : index
    %c0_218 = arith.constant 0 : index
    %c0_219 = arith.constant 0 : index
    %475 = vector.load %arg6[%c1_217, %c0_218, %c0_219] : memref<2x8x128xf32, #tpu.memory_space<vmem>>, vector<1x8x128xf32>
    %476 = vector.shape_cast %475 : vector<1x8x128xf32> to vector<8x128xf32>
    %477 = arith.addf %474, %476 : vector<8x128xf32>
    %478 = math.tanh %477 : vector<8x128xf32>
    %479 = arith.mulf %478, %0 : vector<8x128xf32>
    %480 = arith.addf %479, %1 : vector<8x128xf32>
    %481 = vector.extract_strided_slice %480 {offsets = [0, 0], sizes = [8, 32], strides = [1, 1]} : vector<8x128xf32> to vector<8x32xf32>
    %482 = vector.extract_strided_slice %480 {offsets = [0, 32], sizes = [8, 32], strides = [1, 1]} : vector<8x128xf32> to vector<8x32xf32>
    %483 = vector.extract_strided_slice %480 {offsets = [0, 64], sizes = [8, 32], strides = [1, 1]} : vector<8x128xf32> to vector<8x32xf32>
    %484 = vector.extract_strided_slice %480 {offsets = [0, 96], sizes = [8, 32], strides = [1, 1]} : vector<8x128xf32> to vector<8x32xf32>
    %485 = arith.mulf %482, %438 : vector<8x32xf32>
    %486 = arith.mulf %481, %483 : vector<8x32xf32>
    %487 = arith.addf %485, %486 : vector<8x32xf32>
    %488 = math.tanh %487 : vector<8x32xf32>
    %489 = arith.mulf %484, %488 : vector<8x32xf32>
    %490 = arith.mulf %489, %346 : vector<8x32xf32>
    %cst_220 = arith.constant dense<0.000000e+00> : vector<8xf32>
    %491 = vector.multi_reduction <add>, %490, %cst_220 [1] : vector<8x32xf32> to vector<8xf32>
    %492 = vector.shape_cast %491 : vector<8xf32> to vector<8x1xf32>
    %493 = arith.addf %492, %347 : vector<8x1xf32>
    %c0_221 = arith.constant 0 : index
    %c2 = arith.constant 2 : index
    %494 = vector.load %arg13[%c0_221, %c2] : memref<8x4xf32, #tpu.memory_space<vmem>>, vector<8x1xf32>
    tpu.vector_store %arg13[%c0_221, %c2], %493 {strides = array<i32>} : memref<8x4xf32, #tpu.memory_space<vmem>>, vector<8x1xf32>,
    %495 = vector.broadcast %493 : vector<8x1xf32> to vector<8x128xf32>
    %496 = arith.mulf %495, %344 : vector<8x128xf32>
    %497 = arith.addf %496, %345 : vector<8x128xf32>
    %c0_222 = arith.constant 0 : index
    %c0_223 = arith.constant 0 : index
    %c0_224 = arith.constant 0 : index
    %498 = vector.load %arg5[%c0_222, %c0_223, %c0_224] : memref<2x32x128xf32, #tpu.memory_space<vmem>>, vector<1x32x128xf32>
    %499 = vector.shape_cast %498 : vector<1x32x128xf32> to vector<32x128xf32>
    %cst_225 = arith.constant dense<0.000000e+00> : vector<8x128xf32>
    %500 = tpu.matmul %467, %499, %cst_225 {dimension_numbers = #tpu.dot_dimension_numbers<[1], [0], [0], [1], [0, 0, 1, 1], [], []>} : vector<8x32xf32>, vector<32x128xf32>, vector<8x128xf32> -> vector<8x128xf32>
    %501 = arith.addf %497, %500 : vector<8x128xf32>
    %c0_226 = arith.constant 0 : index
    %c0_227 = arith.constant 0 : index
    %c0_228 = arith.constant 0 : index
    %502 = vector.load %arg6[%c0_226, %c0_227, %c0_228] : memref<2x8x128xf32, #tpu.memory_space<vmem>>, vector<1x8x128xf32>
    %503 = vector.shape_cast %502 : vector<1x8x128xf32> to vector<8x128xf32>
    %504 = arith.addf %501, %503 : vector<8x128xf32>
    %505 = math.tanh %504 : vector<8x128xf32>
    %506 = arith.mulf %505, %0 : vector<8x128xf32>
    %507 = arith.addf %506, %1 : vector<8x128xf32>
    %508 = vector.extract_strided_slice %507 {offsets = [0, 0], sizes = [8, 32], strides = [1, 1]} : vector<8x128xf32> to vector<8x32xf32>
    %509 = vector.extract_strided_slice %507 {offsets = [0, 32], sizes = [8, 32], strides = [1, 1]} : vector<8x128xf32> to vector<8x32xf32>
    %510 = vector.extract_strided_slice %507 {offsets = [0, 64], sizes = [8, 32], strides = [1, 1]} : vector<8x128xf32> to vector<8x32xf32>
    %511 = vector.extract_strided_slice %507 {offsets = [0, 96], sizes = [8, 32], strides = [1, 1]} : vector<8x128xf32> to vector<8x32xf32>
    %512 = arith.mulf %509, %465 : vector<8x32xf32>
    %513 = arith.mulf %508, %510 : vector<8x32xf32>
    %514 = arith.addf %512, %513 : vector<8x32xf32>
    %515 = math.tanh %514 : vector<8x32xf32>
    %516 = arith.mulf %511, %515 : vector<8x32xf32>
    %c1_229 = arith.constant 1 : index
    %c0_230 = arith.constant 0 : index
    %c0_231 = arith.constant 0 : index
    %517 = vector.load %arg4[%c1_229, %c0_230, %c0_231] : memref<2x32x128xf32, #tpu.memory_space<vmem>>, vector<1x32x128xf32>
    %518 = vector.shape_cast %517 : vector<1x32x128xf32> to vector<32x128xf32>
    %cst_232 = arith.constant dense<0.000000e+00> : vector<8x128xf32>
    %519 = tpu.matmul %516, %518, %cst_232 {dimension_numbers = #tpu.dot_dimension_numbers<[1], [0], [0], [1], [0, 0, 1, 1], [], []>} : vector<8x32xf32>, vector<32x128xf32>, vector<8x128xf32> -> vector<8x128xf32>
    %c1_233 = arith.constant 1 : index
    %c0_234 = arith.constant 0 : index
    %c0_235 = arith.constant 0 : index
    %520 = vector.load %arg5[%c1_233, %c0_234, %c0_235] : memref<2x32x128xf32, #tpu.memory_space<vmem>>, vector<1x32x128xf32>
    %521 = vector.shape_cast %520 : vector<1x32x128xf32> to vector<32x128xf32>
    %cst_236 = arith.constant dense<0.000000e+00> : vector<8x128xf32>
    %522 = tpu.matmul %489, %521, %cst_236 {dimension_numbers = #tpu.dot_dimension_numbers<[1], [0], [0], [1], [0, 0, 1, 1], [], []>} : vector<8x32xf32>, vector<32x128xf32>, vector<8x128xf32> -> vector<8x128xf32>
    %523 = arith.addf %519, %522 : vector<8x128xf32>
    %c1_237 = arith.constant 1 : index
    %c0_238 = arith.constant 0 : index
    %c0_239 = arith.constant 0 : index
    %524 = vector.load %arg6[%c1_237, %c0_238, %c0_239] : memref<2x8x128xf32, #tpu.memory_space<vmem>>, vector<1x8x128xf32>
    %525 = vector.shape_cast %524 : vector<1x8x128xf32> to vector<8x128xf32>
    %526 = arith.addf %523, %525 : vector<8x128xf32>
    %527 = math.tanh %526 : vector<8x128xf32>
    %528 = arith.mulf %527, %0 : vector<8x128xf32>
    %529 = arith.addf %528, %1 : vector<8x128xf32>
    %530 = vector.extract_strided_slice %529 {offsets = [0, 0], sizes = [8, 32], strides = [1, 1]} : vector<8x128xf32> to vector<8x32xf32>
    %531 = vector.extract_strided_slice %529 {offsets = [0, 32], sizes = [8, 32], strides = [1, 1]} : vector<8x128xf32> to vector<8x32xf32>
    %532 = vector.extract_strided_slice %529 {offsets = [0, 64], sizes = [8, 32], strides = [1, 1]} : vector<8x128xf32> to vector<8x32xf32>
    %533 = vector.extract_strided_slice %529 {offsets = [0, 96], sizes = [8, 32], strides = [1, 1]} : vector<8x128xf32> to vector<8x32xf32>
    %534 = arith.mulf %531, %487 : vector<8x32xf32>
    %535 = arith.mulf %530, %532 : vector<8x32xf32>
    %536 = arith.addf %534, %535 : vector<8x32xf32>
    %537 = math.tanh %536 : vector<8x32xf32>
    %538 = arith.mulf %533, %537 : vector<8x32xf32>
    %539 = arith.mulf %538, %346 : vector<8x32xf32>
    %cst_240 = arith.constant dense<0.000000e+00> : vector<8xf32>
    %540 = vector.multi_reduction <add>, %539, %cst_240 [1] : vector<8x32xf32> to vector<8xf32>
    %541 = vector.shape_cast %540 : vector<8xf32> to vector<8x1xf32>
    %542 = arith.addf %541, %347 : vector<8x1xf32>
    %c0_241 = arith.constant 0 : index
    %c3 = arith.constant 3 : index
    %543 = vector.load %arg13[%c0_241, %c3] : memref<8x4xf32, #tpu.memory_space<vmem>>, vector<8x1xf32>
    tpu.vector_store %arg13[%c0_241, %c3], %542 {strides = array<i32>} : memref<8x4xf32, #tpu.memory_space<vmem>>, vector<8x1xf32>,
    return
  }
}

</mosaic_0001>

<bundles_post_ra>
// kernel: tpu_custom_call.1
= control target key start
LH: loop header
LB: loop body
LE: loop exit
PB: predicated region body
PF: predicated region fallthrough
CT: control target
= control target key end

     0   :  { %18 = vsyncpa [#allocation3], 0  ;;  %s5431_s0 = inlined_call_operand.vmem [shape: f32[64,32], index: 0, kind: input, shape index: {}]   ;;  %s5432_s1 = inlined_call_operand.vmem [shape: f32[2,32,128], index: 1, kind: input, shape index: {}]   ;;  %s5433_s2 = inlined_call_operand.hbm [shape: f32[2,32,128], index: 2, kind: input, shape index: {}]   ;;  %s5434_s3 = inlined_call_operand.vmem [shape: f32[2,8,128], index: 3, kind: input, shape index: {}]   ;;  %s5435_s4 = inlined_call_operand.hbm [shape: f32[2,32,128], index: 4, kind: input, shape index: {}]   ;;  %s5436_s5 = inlined_call_operand.hbm [shape: f32[2,32,128], index: 5, kind: input, shape index: {}]   ;;  %s5437_s6 = inlined_call_operand.vmem [shape: f32[2,8,128], index: 6, kind: input, shape index: {}]   ;;  %s5438_s7 = inlined_call_operand.vmem [shape: f32[8,128], index: 7, kind: input, shape index: {}]   ;;  %s5439_s8 = inlined_call_operand.vmem [shape: f32[8,128], index: 8, kind: input, shape index: {}]   ;;  %s5440_s9 = inlined_call_operand.vmem [shape: f32[8,128], index: 9, kind: input, shape index: {}]   ;;  %s5441_s10 = inlined_call_operand.vmem [shape: f32[8,128], index: 10, kind: input, shape index: {}]   ;;  %s5442_s11 = inlined_call_operand.vmem [shape: f32[8,32], index: 11, kind: input, shape index: {}]   ;;  %s5443_s12 = inlined_call_operand.vmem [shape: f32[8,1], index: 12, kind: input, shape index: {}]   ;;  %s5444_s13 = inlined_call_operand.vmem [shape: f32[8,4], index: 13, kind: output, shape index: {}]  }
   0x1   :  { %19 = vsyncpa [#allocation5], 0  ;;  %s4622_s25 = smov [#allocation4]   ;;  %s4623_s27 = smov [#allocation2]  }
   0x2   :  { %s43_s26 = sshll.u32 %s4622_s25, 4  ;;  %s29_s28 = sshll.u32 %s4623_s27, 4  ;;  %s44_s26 = int_to_ptr.vmem [resolvable:$true] %s43_s26  ;;  %s4707_s28 = int_to_ptr.vmem [resolvable:$true] %s29_s28 }
   0x3   :  { %s4552_s14 = scalar_lea.hbm %s5435_s4, 1024 }
   0x4   :  { %p4553_p0 = scmp.ne.s32.totalorder %s5435_s4, %s4552_s14  ;;  %p4556_p1 = scmp.lt.u32.totalorder %s4552_s14, %s5435_s4 }
   0x6   :  { %p4558_p2 = pnand %p4556_p1, %p4553_p0 }
   0x8   :  { %4561 = shalt.err (!%p4558_p2)
}
   0x9   :  { %s4562_s19 = scalar_lea.vmem %s44_s26, 1024  ;;  %p4567_p4 = scmp.lt.s32.totalorder %s44_s26, %s44_s26 }
   0xa   :  { %p4563_p3 = scmp.ne.s32.totalorder %s44_s26, %s4562_s19  ;;  %p4568_p5 = scmp.lt.s32.totalorder %s4562_s19, %s4562_s19 }
   0xc   :  { %p4569_p6 = por %p4568_p5, %p4567_p4 }
   0xe   :  { %p4570_p7 = pnand %p4569_p6, %p4563_p3 }
  0x10   :  { %4573 = shalt.err (!%p4570_p7)
}
  0x11   :  { %s4624_s20 = smov 128   ;;  %s4625_s21 = smov 8  }
  0x12   :  { %49 = dma.hbm_to_vmem [thread:$0]  %s5435_s4, 1024, %s44_s26, [#allocation5], %s4624_s20, %s4624_s20, %s4625_s21  }
  0x13   :  { %s4574_s27 = scalar_lea.hbm %s5433_s2, 1024 }
  0x14   :  { %p4575_p8 = scmp.ne.s32.totalorder %s5433_s2, %s4574_s27  ;;  %p4578_p9 = scmp.lt.u32.totalorder %s4574_s27, %s5433_s2 }
  0x16   :  { %p4580_p10 = pnand %p4578_p9, %p4575_p8 }
  0x18   :  { %4583 = shalt.err (!%p4580_p10)
}
  0x19   :  { %s4584_s16 = scalar_lea.vmem %s4707_s28, 1024  ;;  %p4589_p12 = scmp.lt.s32.totalorder %s4707_s28, %s4707_s28 }
  0x1a   :  { %p4585_p11 = scmp.ne.s32.totalorder %s4707_s28, %s4584_s16  ;;  %p4590_p13 = scmp.lt.s32.totalorder %s4584_s16, %s4584_s16 }
  0x1c   :  { %p4591_p0 = por %p4590_p13, %p4589_p12 }
  0x1e   :  { %p4592_p1 = pnand %p4591_p0, %p4585_p11 }
  0x20   :  { %4595 = shalt.err (!%p4592_p1)
}
  0x21   :  { %35 = dma.hbm_to_vmem [thread:$0]  %s5433_s2, 1024, %s4707_s28, [#allocation3], %s4624_s20, %s4624_s20, %s4625_s21  }
  0x22   :  { %s4626_s17 = smov [#allocation6]   ;;  %s4596_s23 = scalar_lea.hbm %s5436_s5, 1024 }
  0x23   :  { %s55_s18 = sshll.u32 %s4626_s17, 4  ;;  %p4597_p2 = scmp.ne.s32.totalorder %s5436_s5, %s4596_s23  ;;  %s56_s18 = int_to_ptr.vmem [resolvable:$true] %s55_s18 }
  0x24   :  { %p4600_p3 = scmp.lt.u32.totalorder %s4596_s23, %s5436_s5 }
  0x26   :  { %p4602_p4 = pnand %p4600_p3, %p4597_p2 }
  0x28   :  { %4605 = shalt.err (!%p4602_p4)
}
  0x29   :  { %s4606_s30 = scalar_lea.vmem %s56_s18, 1024  ;;  %p4611_p6 = scmp.lt.s32.totalorder %s56_s18, %s56_s18 }
  0x2a   :  { %p4607_p5 = scmp.ne.s32.totalorder %s56_s18, %s4606_s30  ;;  %p4612_p7 = scmp.lt.s32.totalorder %s4606_s30, %s4606_s30 }
  0x2c   :  { %p4613_p8 = por %p4612_p7, %p4611_p6 }
  0x2e   :  { %p4614_p9 = pnand %p4613_p8, %p4607_p5 }
  0x30   :  { %4617 = shalt.err (!%p4614_p9)
}
  0x31   :  { %61 = dma.hbm_to_vmem [thread:$0]  %s5436_s5, 1024, %s56_s18, [#allocation5], %s4624_s20, %s4624_s20, %s4625_s21  }
  0x32   :  { %4618 = dma.done.wait [#allocation3], 1024  }
  0x33   :  { %4619 = vsyncadd [#allocation3], 4294966272 }
  0x34   :  { %4620 = dma.done.wait [#allocation5], 2048  }
  0x35   :  { %4621 = vsyncadd [#allocation5], 4294965248  ;;  %v4627_v0 = vmov 0.0|0.0   ;;  %vm4628_vm0 = vmmov 0   ;;  %v4629_v1 = vmov 0.0   ;;  %v95_v2 = vld [vmem:[%s5432_s1] sm:$0xff] }
  0x36   :  { %4221 = vmatprep.subr.bf16.mxu1 %v4627_v0  ;;  %3825 = vmatprep.mubr.msk.f32.mxu1 %vm4628_vm0, %v4629_v1  ;;  %v96_v3 = vld [vmem:[%s5432_s1 + $0x8] sm:$0xff]  ;;  %v229_v4 = vld [vmem:[#allocation2] sm:$0xff]  ;;  %vm99_vm1 = vcmask 261120   ;;  %v97_v7 = vld [vmem:[%s5432_s1 + $0x10] sm:$0xff]  ;;  %s4630_s2 = smov 64   ;;  %s4631_s28 = smov 32  }
  0x37   :  { %v4213_v5 = vpack.c.bf16 %v96_v3, %v95_v2  ;;  %v230_v6 = vld [vmem:[#allocation2 + $0x8] sm:$0xff]  ;;  %v98_v8 = vld [vmem:[%s5432_s1 + $0x18] sm:$0xff]  ;;  %v231_v11 = vld [vmem:[#allocation2 + $0x10] sm:$0xff]  ;;  %s4633_s19 = smov 96   ;;  %vm2651_vm2 = vcmask 7168   ;;  %s4635_s25 = smov 2  }
  0x38   :  { %v4774_v9 = vpack.c.bf16 %v230_v6, %v229_v4  ;;  %v4217_v10 = vpack.c.bf16 %v98_v8, %v97_v7  ;;  %v232_v12 = vld [vmem:[#allocation2 + $0x18] sm:$0xff]  ;;  %v87_v13 = vld [vmem:[%s5431_s0] sm:$0xff]  ;;  %v88_v15 = vld [vmem:[%s5431_s0 + $0x8] sm:$0xff]  ;;  %vm2950_vm3 = vcmask 15368   ;;  %vm3248_vm4 = vcmask 23568  }
  0x39   :  { %4214 = vmatprep.subr.bf16.mxu0 %v4213_v5  ;;  %3805 = vmatprep.mubr.msk.f32.mxu0 %vm99_vm1, %v87_v13  ;;  %v4781_v14 = vpack.c.bf16 %v232_v12, %v231_v11  ;;  %v4799_v19 = vld [vmem:[%s5434_s3] sm:$0xff]  ;;  %v3563_v34 = vld [vmem:[%s5432_s1 + $0x28] sm:$0xff]  ;;  %v89_v38 = vld [vmem:[%s5431_s0 + $0x10] sm:$0xff]  ;;  %vm3546_vm5 = vcmask 31768  }
  0x3a   :  { %4216 = vmatpush3.bf16.msra.mxu0 %v4213_v5  ;;  %4223 = vmatpush3.bf16.msra.mxu1 %v4774_v9  ;;  %v4805_v23 = vld [vmem:[%s5440_s9] sm:$0xff]  ;;  %v336_v37 = vld [vmem:[#allocation2 + $0x28] sm:$0xff]  ;;  %v90_v39 = vld [vmem:[%s5431_s0 + $0x18] sm:$0xff] }
  0x3b   :  { %4218 = vmatprep.subr.bf16.mxu0 %v4217_v10  ;;  %4224 = vmatprep.subr.bf16.mxu1 %v4627_v0  ;;  %v4810_v25 = vld [vmem:[%s5441_s10] sm:$0xff]  ;;  %v337_v41 = vld [vmem:[#allocation2 + $0x30] sm:$0xff]  ;;  %v338_v42 = vld [vmem:[#allocation2 + $0x38] sm:$0xff] }
  0x3c   :  { %v3562_v33 = vld [vmem:[%s5432_s1 + $0x20] sm:$0xff]  ;;  %v3564_v44 = vld [vmem:[%s5432_s1 + $0x30] sm:$0xff]  ;;  %v3565_v45 = vld [vmem:[%s5432_s1 + $0x38] sm:$0xff]  ;;  %v4848_v46 = vpack.c.bf16 %v338_v42, %v337_v41 }
  0x3d   :  { %v335_v35 = vld [vmem:[#allocation2 + $0x20] sm:$0xff]  ;;  %v4825_v36 = vpack.c.bf16 %v3563_v34, %v3562_v33  ;;  %v4850_v47 = vpack.c.bf16 %v3565_v45, %v3564_v44  ;;  %v92_v48 = vld [vmem:[%s5431_s0 + $0x28] sm:$0xff]  ;;  %v93_v49 = vld [vmem:[%s5431_s0 + $0x30] sm:$0xff] }
  0x3e   :  { %4220 = vmatpush3.bf16.msra.mxu0 %v4217_v10  ;;  %4226 = vmatpush3.bf16.msra.mxu1 %v4781_v14  ;;  %v4833_v40 = vpack.c.bf16 %v336_v37, %v335_v35  ;;  %v91_v43 = vld [vmem:[%s5431_s0 + $0x20] sm:$0xff]  ;;  %v4869_v50 = vld [vmem:[%s5431_s0 + $0x38] sm:$0xff]  ;;  %v4914_v2 = vld [vmem:[%s5434_s3 + $0x8] sm:$0xff] }
  0x3f   :  { %4233 = vmatprep.subr.bf16.mxu0 %v4627_v0  ;;  %4227 = vmatprep.subr.bf16.mxu1 %v4627_v0 }
  0x41   :  { %3806 = vmatmul.mubr.msk.f32.vlgmr.msra.gmra.mrb[0].mxu0 %vm99_vm1, %v88_v15  ;;  %3826 = vmatmul.mubr.f32.vlgmr.msra.gmra.mrb[0].mxu1 %v4629_v1 }
  0x42   :  { %3836 = vmatprep.mubr.msk.f32.mxu1 %vm4628_vm0, %v4629_v1  ;;  %3808 = vmatprep.mubr.msk.f32.mxu0 %vm99_vm1, %v89_v38 }
  0x43   :  { %4235 = vmatpush3.bf16.msra.mxu0 %v4825_v36  ;;  %4229 = vmatpush3.bf16.msra.mxu1 %v4833_v40 }
  0x44   :  { %4230 = vmatprep.subr.bf16.mxu1 %v4627_v0  ;;  %4236 = vmatprep.subr.bf16.mxu0 %v4627_v0 }
  0x45   :  { %3809 = vmatmul.mubr.msk.f32.gmra.mrb[2].mxu0 %vm99_vm1, %v90_v39 }
  0x46   :  { %3811 = vmatprep.mubr.msk.f32.mxu0 %vm99_vm1, %v91_v43 }
  0x47   :  { %4238 = vmatpush3.bf16.msra.mxu0 %v4850_v47  ;;  %4232 = vmatpush3.bf16.msra.mxu1 %v4848_v46 }
  0x48   :  { %4239 = vmatprep.subr.bf16.mxu1 %v4627_v0  ;;  %4245 = vmatprep.subr.bf16.mxu0 %v4627_v0 }
  0x49   :  { %3812 = vmatmul.mubr.msk.f32.gmra.mrb[4].mxu0 %vm99_vm1, %v92_v48 }
  0x4a   :  { %3814 = vmatprep.mubr.msk.f32.mxu0 %vm99_vm1, %v93_v49  ;;  %3837 = vmatmul.mubr.f32.vlgmr.msra.gmra.mrb[2].mxu1 %v4629_v1 }
  0x4b   :  { %4241 = vmatpush3.bf16.msra.mxu1 %v4774_v9  ;;  %3858 = vmatprep.mubr.msk.f32.mxu1 %vm4628_vm0, %v4629_v1 }
  0x4c   :  { %4242 = vmatprep.subr.bf16.mxu1 %v4627_v0 }
  0x4d   :  { %3815 = vmatmul.mubr.msk.f32.gmra.mrb[6].mxu0 %vm99_vm1, %v4869_v50 }
  0x4e   :  { %3847 = vmatprep.mubr.msk.f32.mxu0 %vm4628_vm0, %v4629_v1 }
  0x4f   :  { %4244 = vmatpush3.bf16.msra.mxu1 %v4781_v14 }
  0x50   :  { %4251 = vmatprep.subr.bf16.mxu1 %v4627_v0 }
 0x114   :  { %v4794_v16 = vpop.f32.mrb[0].mxu0  ;;  %v302_v17 = vpop.f32.mrb[0].mxu1 }
 0x115   :  { %v190_v18 = vpop.f32.mrb[1].mxu0  ;;  %v3827_v20 = vpop.f32.mrb[1].mxu1 }
 0x116   :  { %v306_v21 = vadd.f32 %v302_v17, %v190_v18 }
 0x118   :  { %v308_v22 = vadd.f32 %v4799_v19, %v306_v21  ;;  %v4885_v54 = vpop.f32.mrb[2].mxu0 }
 0x119   :  { %v4887_v55 = vpop.f32.mrb[3].mxu0 }
 0x11a   :  { %4454 = vtanh.f32 %v308_v22 }
 0x11c   :  { %v4889_v56 = vpop.f32.mrb[4].mxu0 }
 0x11d   :  { %v4891_v57 = vpop.f32.mrb[5].mxu0  ;;  %v405_v58 = vpop.f32.mrb[2].mxu1 }
 0x11e   :  { %v3838_v60 = vpop.f32.mrb[3].mxu1 }
 0x120   :  { %v4893_v59 = vpop.f32.mrb[6].mxu0 }
 0x121   :  { %v4895_v61 = vpop.f32.mrb[7].mxu0 }
 0x124   :  { %v4455_v24 = vpop.eup %4454 }
 0x125   :  { %v310_v26 = vmul.f32 %v4455_v24, %v4805_v23 }
 0x127   :  { %v311_v27 = vadd.f32 %v310_v26, %v4810_v25 }
 0x129   :  { %314 = vrot.lane.b32.xlu0 %v311_v27, %s4630_s2  ;;  %v312_v30 = vmul.f32 0.0, %v311_v27 }
 0x19b   :  { %v315_v28 = vpop.permute.xlu0 %314 }
 0x19c   :  { %v317_v29 = vmul.f32 %v315_v28, %v311_v27 }
 0x19e   :  { %319 = vrot.lane.b32.xlu0 %v317_v29, %s4631_s28 }
 0x210   :  { %v320_v31 = vpop.permute.xlu0 %319 }
 0x211   :  { %v4816_v32 = vadd.f32 %v320_v31, %v312_v30 }
 0x213   :  { %4456 = vtanh.f32 %v4816_v32 }
 0x21d   :  { %v4457_v51 = vpop.eup %4456 }
 0x21e   :  { %325 = vrot.lane.b32.xlu1 %v4457_v51, %s4630_s2 }
 0x290   :  { %v326_v52 = vpop.permute.xlu1 %325 }
 0x291   :  { %v328_v53 = vmul.f32 %v326_v52, %v311_v27 }
 0x293   :  { %410 = vrot.lane.b32.xlu1 %v328_v53, %s4631_s28 }
 0x305   :  { %v411_v62 = vpop.permute.xlu1 %410 }
 0x306   :  { %3848 = vmatmul.mubr.msk.f32.vlgmr.msra.gmra.mrb[8].mxu0 %vm99_vm1, %v411_v62  ;;  %3859 = vmatmul.mubr.msk.f32.vlgmr.msra.gmra.mrb[4].mxu1 %vm99_vm1, %v411_v62 }
 0x307   :  { %4247 = vmatpush3.bf16.msra.mxu0 %v4833_v40  ;;  %4253 = vmatpush3.bf16.msra.mxu1 %v4825_v36 }
 0x308   :  { %4248 = vmatprep.subr.bf16.mxu0 %v4627_v0  ;;  %4254 = vmatprep.subr.bf16.mxu1 %v4627_v0 }
 0x309   :  { %3880 = vmatprep.mubr.msk.f32.mxu1 %vm4628_vm0, %v4629_v1  ;;  %3869 = vmatprep.mubr.msk.f32.mxu0 %vm4628_vm0, %v4629_v1 }
 0x30b   :  { %4250 = vmatpush3.bf16.msra.mxu0 %v4848_v46  ;;  %4256 = vmatpush3.bf16.msra.mxu1 %v4850_v47 }
 0x30c   :  { %4257 = vmatprep.subr.bf16.mxu0 %v4627_v0  ;;  %4263 = vmatprep.subr.bf16.mxu1 %v4627_v0 }
 0x3d9   :  { %v480_v63 = vpop.f32.mrb[8].mxu0  ;;  %v573_v3 = vpop.f32.mrb[4].mxu1 }
 0x3da   :  { %v481_v4 = vadd.f32 %v480_v63, %v405_v58  ;;  %v577_v5 = vadd.f32 %v4794_v16, %v573_v3  ;;  %v3849_v6 = vpop.f32.mrb[9].mxu0  ;;  %v3860_v7 = vpop.f32.mrb[5].mxu1 }
 0x3dc   :  { %v486_v8 = vadd.f32 %v4914_v2, %v481_v4  ;;  %v578_v10 = vadd.f32 %v577_v5, %v4799_v19 }
 0x3de   :  { %4458 = vtanh.f32 %v486_v8 }
 0x3df   :  { %4460 = vtanh.f32 %v578_v10 }
 0x3e8   :  { %v4459_v11 = vpop.eup %4458 }
 0x3e9   :  { %v4461_v12 = vpop.eup %4460  ;;  %v488_v13 = vmul.f32 %v4459_v11, %v4805_v23 }
 0x3ea   :  { %v580_v15 = vmul.f32 %v4461_v12, %v4805_v23 }
 0x3eb   :  { %v489_v17 = vadd.f32 %v488_v13, %v4810_v25 }
 0x3ec   :  { %v581_v18 = vadd.f32 %v580_v15, %v4810_v25 }
 0x3ed   :  { %492 = vrot.lane.b32.xlu0 %v489_v17, %s4630_s2  ;;  %v490_v24 = vmul.f32 0.0, %v489_v17 }
 0x3ee   :  { %584 = vrot.lane.b32.xlu1 %v581_v18, %s4630_s2  ;;  %v582_v26 = vmul.f32 %v581_v18, %v4816_v32 }
 0x45f   :  { %v493_v16 = vpop.permute.xlu0 %492 }
 0x460   :  { %v585_v20 = vpop.permute.xlu1 %584  ;;  %v495_v21 = vmul.f32 %v493_v16, %v489_v17 }
 0x461   :  { %v587_v22 = vmul.f32 %v585_v20, %v581_v18 }
 0x462   :  { %497 = vrot.lane.b32.xlu0 %v495_v21, %s4631_s28 }
 0x463   :  { %589 = vrot.lane.b32.xlu1 %v587_v22, %s4631_s28 }
 0x4d4   :  { %v498_v27 = vpop.permute.xlu0 %497 }
 0x4d5   :  { %v590_v28 = vpop.permute.xlu1 %589  ;;  %v500_v29 = vadd.f32 %v498_v27, %v490_v24 }
 0x4d6   :  { %v4928_v30 = vadd.f32 %v590_v28, %v582_v26 }
 0x4d7   :  { %4462 = vtanh.f32 %v500_v29 }
 0x4d8   :  { %4464 = vtanh.f32 %v4928_v30 }
 0x4e1   :  { %v4463_v31 = vpop.eup %4462 }
 0x4e2   :  { %v4465_v33 = vpop.eup %4464  ;;  %503 = vrot.lane.b32.xlu0 %v4463_v31, %s4630_s2 }
 0x4e3   :  { %595 = vrot.lane.b32.xlu1 %v4465_v33, %s4630_s2 }
 0x554   :  { %v504_v34 = vpop.permute.xlu0 %503 }
 0x555   :  { %v596_v35 = vpop.permute.xlu1 %595  ;;  %v506_v37 = vmul.f32 %v504_v34, %v489_v17 }
 0x556   :  { %v598_v38 = vmul.f32 %v596_v35, %v581_v18 }
 0x557   :  { %600 = vrot.lane.b32.xlu0 %v506_v37, %s4631_s28 }
 0x558   :  { %675 = vrot.lane.b32.xlu1 %v598_v38, %s4631_s28 }
 0x5c9   :  { %v601_v32 = vpop.permute.xlu0 %600 }
 0x5ca   :  { %v676_v39 = vpop.permute.xlu1 %675  ;;  %3870 = vmatmul.mubr.msk.f32.vlgmr.msra.gmra.mrb[10].mxu0 %vm99_vm1, %v601_v32 }
 0x5cb   :  { %3881 = vmatmul.mubr.msk.f32.vlgmr.msra.gmra.mrb[6].mxu1 %vm99_vm1, %v676_v39  ;;  %4259 = vmatpush3.bf16.msra.mxu0 %v4774_v9 }
 0x5cc   :  { %4260 = vmatprep.subr.bf16.mxu0 %v4627_v0  ;;  %3891 = vmatprep.mubr.msk.f32.mxu0 %vm4628_vm0, %v4629_v1 }
 0x5cd   :  { %4265 = vmatpush3.bf16.msra.mxu1 %v4833_v40  ;;  %3902 = vmatprep.mubr.msk.f32.mxu1 %vm4628_vm0, %v4629_v1 }
 0x5ce   :  { %4266 = vmatprep.subr.bf16.mxu1 %v4627_v0 }
 0x5cf   :  { %4262 = vmatpush3.bf16.msra.mxu0 %v4781_v14 }
 0x5d0   :  { %4269 = vmatprep.subr.bf16.mxu0 %v4627_v0 }
 0x5d1   :  { %4268 = vmatpush3.bf16.msra.mxu1 %v4848_v46 }
 0x5d2   :  { %3892 = vmatmul.mubr.msk.f32.vlgmr.msra.gmra.mrb[12].mxu0 %vm99_vm1, %v676_v39  ;;  %4275 = vmatprep.subr.bf16.mxu1 %v4627_v0 }
 0x5d3   :  { %4271 = vmatpush3.bf16.msra.mxu0 %v4825_v36  ;;  %3913 = vmatprep.mubr.msk.f32.mxu0 %vm4628_vm0, %v4629_v1 }
 0x5d4   :  { %4272 = vmatprep.subr.bf16.mxu0 %v4627_v0 }
 0x5d7   :  { %4274 = vmatpush3.bf16.msra.mxu0 %v4850_v47 }
 0x5d8   :  { %4281 = vmatprep.subr.bf16.mxu0 %v4627_v0 }
 0x69d   :  { %v670_v41 = vpop.f32.mrb[10].mxu0 }
 0x69e   :  { %v745_v42 = vpop.f32.mrb[6].mxu1  ;;  %v3871_v43 = vpop.f32.mrb[11].mxu0 }
 0x69f   :  { %v746_v44 = vadd.f32 %v745_v42, %v670_v41  ;;  %v3882_v45 = vpop.f32.mrb[7].mxu1 }
 0x6a1   :  { %v749_v48 = vadd.f32 %v4914_v2, %v746_v44 }
 0x6a3   :  { %4466 = vtanh.f32 %v749_v48 }
 0x6a5   :  { %v836_v49 = vpop.f32.mrb[12].mxu0 }
 0x6a6   :  { %v840_v51 = vadd.f32 %v836_v49, %v4887_v55  ;;  %v3893_v52 = vpop.f32.mrb[13].mxu0 }
 0x6a8   :  { %v841_v53 = vadd.f32 %v840_v51, %v4799_v19 }
 0x6aa   :  { %4468 = vtanh.f32 %v841_v53 }
 0x6ad   :  { %v4467_v58 = vpop.eup %4466 }
 0x6ae   :  { %v751_v60 = vmul.f32 %v4467_v58, %v4805_v23 }
 0x6b0   :  { %v752_v62 = vadd.f32 %v751_v60, %v4810_v25 }
 0x6b2   :  { %755 = vrot.lane.b32.xlu0 %v752_v62, %s4630_s2  ;;  %v753_v8 = vmul.f32 %v752_v62, %v500_v29 }
 0x6b4   :  { %v4469_v63 = vpop.eup %4468 }
 0x6b5   :  { %v843_v3 = vmul.f32 %v4469_v63, %v4805_v23 }
 0x6b7   :  { %v844_v4 = vadd.f32 %v843_v3, %v4810_v25 }
 0x6b9   :  { %847 = vrot.lane.b32.xlu1 %v844_v4, %s4630_s2  ;;  %v845_v12 = vmul.f32 %v844_v4, %v4928_v30 }
 0x724   :  { %v756_v5 = vpop.permute.xlu0 %755 }
 0x725   :  { %v758_v55 = vmul.f32 %v756_v5, %v752_v62 }
 0x727   :  { %760 = vrot.lane.b32.xlu0 %v758_v55, %s4631_s28 }
 0x72b   :  { %v848_v6 = vpop.permute.xlu1 %847 }
 0x72c   :  { %v850_v7 = vmul.f32 %v848_v6, %v844_v4 }
 0x72e   :  { %852 = vrot.lane.b32.xlu1 %v850_v7, %s4631_s28 }
 0x799   :  { %v761_v10 = vpop.permute.xlu0 %760 }
 0x79a   :  { %v763_v11 = vadd.f32 %v761_v10, %v753_v8 }
 0x79c   :  { %4470 = vtanh.f32 %v763_v11 }
 0x7a0   :  { %v853_v13 = vpop.permute.xlu1 %852 }
 0x7a1   :  { %v855_v15 = vadd.f32 %v853_v13, %v845_v12 }
 0x7a3   :  { %4472 = vtanh.f32 %v855_v15 }
 0x7a6   :  { %v4471_v17 = vpop.eup %4470 }
 0x7a7   :  { %766 = vrot.lane.b32.xlu0 %v4471_v17, %s4630_s2 }
 0x7ad   :  { %v4473_v18 = vpop.eup %4472 }
 0x7ae   :  { %858 = vrot.lane.b32.xlu1 %v4473_v18, %s4630_s2 }
 0x819   :  { %v767_v16 = vpop.permute.xlu0 %766 }
 0x81a   :  { %v769_v20 = vmul.f32 %v767_v16, %v752_v62 }
 0x81c   :  { %863 = vrot.lane.b32.xlu0 %v769_v20, %s4631_s28 }
 0x820   :  { %v859_v21 = vpop.permute.xlu1 %858 }
 0x821   :  { %v861_v22 = vmul.f32 %v859_v21, %v844_v4 }
 0x823   :  { %938 = vrot.lane.b32.xlu1 %v861_v22, %s4631_s28 }
 0x88e   :  { %v864_v24 = vpop.permute.xlu0 %863 }
 0x88f   :  { %3903 = vmatmul.mubr.msk.f32.vlgmr.msra.gmra.mrb[8].mxu1 %vm99_vm1, %v864_v24 }
 0x890   :  { %4277 = vmatpush3.bf16.msra.mxu1 %v4774_v9  ;;  %3924 = vmatprep.mubr.msk.f32.mxu1 %vm4628_vm0, %v4629_v1 }
 0x891   :  { %4278 = vmatprep.subr.bf16.mxu1 %v4627_v0 }
 0x894   :  { %4280 = vmatpush3.bf16.msra.mxu1 %v4781_v14 }
 0x895   :  { %v939_v26 = vpop.permute.xlu1 %938  ;;  %4287 = vmatprep.subr.bf16.mxu1 %v4627_v0 }
 0x896   :  { %3914 = vmatmul.mubr.msk.f32.vlgmr.msra.gmra.mrb[14].mxu0 %vm99_vm1, %v939_v26 }
 0x897   :  { %3925 = vmatmul.mubr.msk.f32.vlgmr.msra.gmra.mrb[10].mxu1 %vm99_vm1, %v939_v26  ;;  %4283 = vmatpush3.bf16.msra.mxu0 %v4833_v40 }
 0x898   :  { %4289 = vmatpush3.bf16.msra.mxu1 %v4825_v36  ;;  %4284 = vmatprep.subr.bf16.mxu0 %v4627_v0 }
 0x899   :  { %4290 = vmatprep.subr.bf16.mxu1 %v4627_v0  ;;  %3946 = vmatprep.mubr.msk.f32.mxu1 %vm4628_vm0, %v4629_v1 }
 0x89a   :  { %3935 = vmatprep.mubr.msk.f32.mxu0 %vm4628_vm0, %v4629_v1 }
 0x89b   :  { %4286 = vmatpush3.bf16.msra.mxu0 %v4848_v46 }
 0x89c   :  { %4292 = vmatpush3.bf16.msra.mxu1 %v4850_v47  ;;  %4293 = vmatprep.subr.bf16.mxu0 %v4627_v0 }
 0x89d   :  { %4299 = vmatprep.subr.bf16.mxu1 %v4627_v0 }
 0x962   :  { %v933_v27 = vpop.f32.mrb[8].mxu1 }
 0x963   :  { %v3904_v28 = vpop.f32.mrb[9].mxu1 }
 0x969   :  { %v1008_v29 = vpop.f32.mrb[14].mxu0 }
 0x96a   :  { %v1009_v30 = vadd.f32 %v1008_v29, %v933_v27  ;;  %v1099_v31 = vpop.f32.mrb[10].mxu1  ;;  %v3915_v33 = vpop.f32.mrb[15].mxu0 }
 0x96b   :  { %v1103_v34 = vadd.f32 %v4885_v54, %v1099_v31  ;;  %v3926_v35 = vpop.f32.mrb[11].mxu1 }
 0x96c   :  { %v1012_v37 = vadd.f32 %v4914_v2, %v1009_v30 }
 0x96d   :  { %v1104_v38 = vadd.f32 %v1103_v34, %v4799_v19 }
 0x96e   :  { %4474 = vtanh.f32 %v1012_v37 }
 0x96f   :  { %4476 = vtanh.f32 %v1104_v38 }
 0x978   :  { %v4475_v32 = vpop.eup %4474 }
 0x979   :  { %v4477_v39 = vpop.eup %4476  ;;  %v1014_v41 = vmul.f32 %v4475_v32, %v4805_v23 }
 0x97a   :  { %v1106_v42 = vmul.f32 %v4477_v39, %v4805_v23 }
 0x97b   :  { %v1015_v43 = vadd.f32 %v1014_v41, %v4810_v25 }
 0x97c   :  { %v1107_v44 = vadd.f32 %v1106_v42, %v4810_v25 }
 0x97d   :  { %1018 = vrot.lane.b32.xlu0 %v1015_v43, %s4630_s2  ;;  %v1016_v51 = vmul.f32 %v1015_v43, %v763_v11 }
 0x97e   :  { %1110 = vrot.lane.b32.xlu1 %v1107_v44, %s4630_s2  ;;  %v1108_v52 = vmul.f32 %v1107_v44, %v855_v15 }
 0x9ef   :  { %v1019_v54 = vpop.permute.xlu0 %1018 }
 0x9f0   :  { %v1111_v45 = vpop.permute.xlu1 %1110  ;;  %v1021_v48 = vmul.f32 %v1019_v54, %v1015_v43 }
 0x9f1   :  { %v1113_v49 = vmul.f32 %v1111_v45, %v1107_v44 }
 0x9f2   :  { %1023 = vrot.lane.b32.xlu0 %v1021_v48, %s4631_s28 }
 0x9f3   :  { %1115 = vrot.lane.b32.xlu1 %v1113_v49, %s4631_s28 }
 0xa64   :  { %v1024_v53 = vpop.permute.xlu0 %1023 }
 0xa65   :  { %v1116_v58 = vpop.permute.xlu1 %1115  ;;  %v1026_v60 = vadd.f32 %v1024_v53, %v1016_v51 }
 0xa66   :  { %v5004_v62 = vadd.f32 %v1116_v58, %v1108_v52 }
 0xa67   :  { %4478 = vtanh.f32 %v1026_v60 }
 0xa68   :  { %4480 = vtanh.f32 %v5004_v62 }
 0xa71   :  { %v4479_v63 = vpop.eup %4478 }
 0xa72   :  { %v4481_v3 = vpop.eup %4480  ;;  %1029 = vrot.lane.b32.xlu0 %v4479_v63, %s4630_s2 }
 0xa73   :  { %1121 = vrot.lane.b32.xlu1 %v4481_v3, %s4630_s2 }
 0xae4   :  { %v1030_v4 = vpop.permute.xlu0 %1029 }
 0xae5   :  { %v1122_v5 = vpop.permute.xlu1 %1121  ;;  %v1032_v55 = vmul.f32 %v1030_v4, %v1015_v43 }
 0xae6   :  { %v1124_v6 = vmul.f32 %v1122_v5, %v1107_v44 }
 0xae7   :  { %1126 = vrot.lane.b32.xlu0 %v1032_v55, %s4631_s28 }
 0xae8   :  { %1201 = vrot.lane.b32.xlu1 %v1124_v6, %s4631_s28 }
 0xb59   :  { %v1127_v7 = vpop.permute.xlu0 %1126 }
 0xb5a   :  { %v1202_v8 = vpop.permute.xlu1 %1201  ;;  %3936 = vmatmul.mubr.msk.f32.vlgmr.msra.gmra.mrb[16].mxu0 %vm99_vm1, %v1127_v7 }
 0xb5b   :  { %3947 = vmatmul.mubr.msk.f32.vlgmr.msra.gmra.mrb[12].mxu1 %vm99_vm1, %v1202_v8  ;;  %4295 = vmatpush3.bf16.msra.mxu0 %v4774_v9 }
 0xb5c   :  { %4296 = vmatprep.subr.bf16.mxu0 %v4627_v0  ;;  %3957 = vmatprep.mubr.msk.f32.mxu0 %vm4628_vm0, %v4629_v1 }
 0xb5d   :  { %4301 = vmatpush3.bf16.msra.mxu1 %v4833_v40  ;;  %3968 = vmatprep.mubr.msk.f32.mxu1 %vm4628_vm0, %v4629_v1 }
 0xb5e   :  { %4302 = vmatprep.subr.bf16.mxu1 %v4627_v0 }
 0xb5f   :  { %4298 = vmatpush3.bf16.msra.mxu0 %v4781_v14 }
 0xb60   :  { %4305 = vmatprep.subr.bf16.mxu0 %v4627_v0 }
 0xb61   :  { %4304 = vmatpush3.bf16.msra.mxu1 %v4848_v46 }
 0xb62   :  { %3958 = vmatmul.mubr.msk.f32.vlgmr.msra.gmra.mrb[18].mxu0 %vm99_vm1, %v1202_v8  ;;  %4311 = vmatprep.subr.bf16.mxu1 %v4627_v0 }
 0xb63   :  { %4307 = vmatpush3.bf16.msra.mxu0 %v4825_v36  ;;  %3979 = vmatprep.mubr.msk.f32.mxu0 %vm4628_vm0, %v4629_v1 }
 0xb64   :  { %4308 = vmatprep.subr.bf16.mxu0 %v4627_v0 }
 0xb67   :  { %4310 = vmatpush3.bf16.msra.mxu0 %v4850_v47 }
 0xb68   :  { %4317 = vmatprep.subr.bf16.mxu0 %v4627_v0 }
 0xc2d   :  { %v1196_v10 = vpop.f32.mrb[16].mxu0 }
 0xc2e   :  { %v1271_v11 = vpop.f32.mrb[12].mxu1  ;;  %v3937_v12 = vpop.f32.mrb[17].mxu0 }
 0xc2f   :  { %v1272_v13 = vadd.f32 %v1271_v11, %v1196_v10  ;;  %v3948_v15 = vpop.f32.mrb[13].mxu1 }
 0xc31   :  { %v1275_v17 = vadd.f32 %v4914_v2, %v1272_v13 }
 0xc33   :  { %4482 = vtanh.f32 %v1275_v17 }
 0xc35   :  { %v1362_v18 = vpop.f32.mrb[18].mxu0 }
 0xc36   :  { %v1366_v16 = vadd.f32 %v1362_v18, %v4891_v57  ;;  %v3959_v20 = vpop.f32.mrb[19].mxu0 }
 0xc38   :  { %v1367_v21 = vadd.f32 %v1366_v16, %v4799_v19 }
 0xc3a   :  { %4484 = vtanh.f32 %v1367_v21 }
 0xc3d   :  { %v4483_v22 = vpop.eup %4482 }
 0xc3e   :  { %v1277_v24 = vmul.f32 %v4483_v22, %v4805_v23 }
 0xc40   :  { %v1278_v26 = vadd.f32 %v1277_v24, %v4810_v25 }
 0xc42   :  { %1281 = vrot.lane.b32.xlu0 %v1278_v26, %s4630_s2  ;;  %v1279_v34 = vmul.f32 %v1278_v26, %v1026_v60 }
 0xc44   :  { %v4485_v27 = vpop.eup %4484 }
 0xc45   :  { %v1369_v28 = vmul.f32 %v4485_v27, %v4805_v23 }
 0xc47   :  { %v1370_v29 = vadd.f32 %v1369_v28, %v4810_v25 }
 0xc49   :  { %1373 = vrot.lane.b32.xlu1 %v1370_v29, %s4630_s2  ;;  %v1371_v38 = vmul.f32 %v1370_v29, %v5004_v62 }
 0xcb4   :  { %v1282_v30 = vpop.permute.xlu0 %1281 }
 0xcb5   :  { %v1284_v57 = vmul.f32 %v1282_v30, %v1278_v26 }
 0xcb7   :  { %1286 = vrot.lane.b32.xlu0 %v1284_v57, %s4631_s28 }
 0xcbb   :  { %v1374_v31 = vpop.permute.xlu1 %1373 }
 0xcbc   :  { %v1376_v33 = vmul.f32 %v1374_v31, %v1370_v29 }
 0xcbe   :  { %1378 = vrot.lane.b32.xlu1 %v1376_v33, %s4631_s28 }
 0xd29   :  { %v1287_v35 = vpop.permute.xlu0 %1286 }
 0xd2a   :  { %v1289_v37 = vadd.f32 %v1287_v35, %v1279_v34 }
 0xd2c   :  { %4486 = vtanh.f32 %v1289_v37 }
 0xd30   :  { %v1379_v32 = vpop.permute.xlu1 %1378 }
 0xd31   :  { %v1381_v39 = vadd.f32 %v1379_v32, %v1371_v38 }
 0xd33   :  { %4488 = vtanh.f32 %v1381_v39 }
 0xd36   :  { %v4487_v41 = vpop.eup %4486 }
 0xd37   :  { %1292 = vrot.lane.b32.xlu0 %v4487_v41, %s4630_s2 }
 0xd3d   :  { %v4489_v42 = vpop.eup %4488 }
 0xd3e   :  { %1384 = vrot.lane.b32.xlu1 %v4489_v42, %s4630_s2 }
 0xda9   :  { %v1293_v43 = vpop.permute.xlu0 %1292 }
 0xdaa   :  { %v1295_v44 = vmul.f32 %v1293_v43, %v1278_v26 }
 0xdac   :  { %1389 = vrot.lane.b32.xlu0 %v1295_v44, %s4631_s28 }
 0xdb0   :  { %v1385_v54 = vpop.permute.xlu1 %1384 }
 0xdb1   :  { %v1387_v45 = vmul.f32 %v1385_v54, %v1370_v29 }
 0xdb3   :  { %1464 = vrot.lane.b32.xlu1 %v1387_v45, %s4631_s28 }
 0xe1e   :  { %v1390_v48 = vpop.permute.xlu0 %1389 }
 0xe1f   :  { %3969 = vmatmul.mubr.msk.f32.vlgmr.msra.gmra.mrb[14].mxu1 %vm99_vm1, %v1390_v48 }
 0xe20   :  { %4313 = vmatpush3.bf16.msra.mxu1 %v4774_v9  ;;  %3990 = vmatprep.mubr.msk.f32.mxu1 %vm4628_vm0, %v4629_v1 }
 0xe21   :  { %4314 = vmatprep.subr.bf16.mxu1 %v4627_v0 }
 0xe24   :  { %4316 = vmatpush3.bf16.msra.mxu1 %v4781_v14 }
 0xe25   :  { %v1465_v49 = vpop.permute.xlu1 %1464  ;;  %4323 = vmatprep.subr.bf16.mxu1 %v4627_v0 }
 0xe26   :  { %3980 = vmatmul.mubr.msk.f32.vlgmr.msra.gmra.mrb[20].mxu0 %vm99_vm1, %v1465_v49 }
 0xe27   :  { %3991 = vmatmul.mubr.msk.f32.vlgmr.msra.gmra.mrb[16].mxu1 %vm99_vm1, %v1465_v49  ;;  %4319 = vmatpush3.bf16.msra.mxu0 %v4833_v40 }
 0xe28   :  { %4325 = vmatpush3.bf16.msra.mxu1 %v4825_v36  ;;  %4320 = vmatprep.subr.bf16.mxu0 %v4627_v0 }
 0xe29   :  { %4326 = vmatprep.subr.bf16.mxu1 %v4627_v0  ;;  %4012 = vmatprep.mubr.msk.f32.mxu1 %vm4628_vm0, %v4629_v1 }
 0xe2a   :  { %4001 = vmatprep.mubr.msk.f32.mxu0 %vm4628_vm0, %v4629_v1 }
 0xe2b   :  { %4322 = vmatpush3.bf16.msra.mxu0 %v4848_v46 }
 0xe2c   :  { %4328 = vmatpush3.bf16.msra.mxu1 %v4850_v47  ;;  %4329 = vmatprep.subr.bf16.mxu0 %v4627_v0 }
 0xe2d   :  { %4335 = vmatprep.subr.bf16.mxu1 %v4627_v0 }
 0xef2   :  { %v1459_v51 = vpop.f32.mrb[14].mxu1 }
 0xef3   :  { %v3970_v52 = vpop.f32.mrb[15].mxu1 }
 0xef9   :  { %v1534_v53 = vpop.f32.mrb[20].mxu0 }
 0xefa   :  { %v1535_v58 = vadd.f32 %v1534_v53, %v1459_v51  ;;  %v1625_v60 = vpop.f32.mrb[16].mxu1  ;;  %v3981_v62 = vpop.f32.mrb[21].mxu0 }
 0xefb   :  { %v1629_v63 = vadd.f32 %v4889_v56, %v1625_v60  ;;  %v3992_v3 = vpop.f32.mrb[17].mxu1 }
 0xefc   :  { %v1538_v4 = vadd.f32 %v4914_v2, %v1535_v58 }
 0xefd   :  { %v1630_v5 = vadd.f32 %v1629_v63, %v4799_v19 }
 0xefe   :  { %4490 = vtanh.f32 %v1538_v4 }
 0xeff   :  { %4492 = vtanh.f32 %v1630_v5 }
 0xf08   :  { %v4491_v55 = vpop.eup %4490 }
 0xf09   :  { %v4493_v6 = vpop.eup %4492  ;;  %v1540_v7 = vmul.f32 %v4491_v55, %v4805_v23 }
 0xf0a   :  { %v1632_v8 = vmul.f32 %v4493_v6, %v4805_v23 }
 0xf0b   :  { %v1541_v10 = vadd.f32 %v1540_v7, %v4810_v25 }
 0xf0c   :  { %v1633_v11 = vadd.f32 %v1632_v8, %v4810_v25 }
 0xf0d   :  { %1544 = vrot.lane.b32.xlu0 %v1541_v10, %s4630_s2  ;;  %v1542_v17 = vmul.f32 %v1541_v10, %v1289_v37 }
 0xf0e   :  { %1636 = vrot.lane.b32.xlu1 %v1633_v11, %s4630_s2  ;;  %v1634_v18 = vmul.f32 %v1633_v11, %v1381_v39 }
 0xf7f   :  { %v1545_v56 = vpop.permute.xlu0 %1544 }
 0xf80   :  { %v1637_v12 = vpop.permute.xlu1 %1636  ;;  %v1547_v13 = vmul.f32 %v1545_v56, %v1541_v10 }
 0xf81   :  { %v1639_v15 = vmul.f32 %v1637_v12, %v1633_v11 }
 0xf82   :  { %1549 = vrot.lane.b32.xlu0 %v1547_v13, %s4631_s28 }
 0xf83   :  { %1641 = vrot.lane.b32.xlu1 %v1639_v15, %s4631_s28 }
 0xff4   :  { %v1550_v16 = vpop.permute.xlu0 %1549 }
 0xff5   :  { %v1642_v20 = vpop.permute.xlu1 %1641  ;;  %v1552_v21 = vadd.f32 %v1550_v16, %v1542_v17 }
 0xff6   :  { %v5080_v22 = vadd.f32 %v1642_v20, %v1634_v18 }
 0xff7   :  { %4494 = vtanh.f32 %v1552_v21 }
 0xff8   :  { %4496 = vtanh.f32 %v5080_v22 }
0x1001   :  { %v4495_v24 = vpop.eup %4494 }
0x1002   :  { %v4497_v26 = vpop.eup %4496  ;;  %1555 = vrot.lane.b32.xlu0 %v4495_v24, %s4630_s2 }
0x1003   :  { %1647 = vrot.lane.b32.xlu1 %v4497_v26, %s4630_s2 }
0x1074   :  { %v1556_v27 = vpop.permute.xlu0 %1555 }
0x1075   :  { %v1648_v28 = vpop.permute.xlu1 %1647  ;;  %v1558_v29 = vmul.f32 %v1556_v27, %v1541_v10 }
0x1076   :  { %v1650_v30 = vmul.f32 %v1648_v28, %v1633_v11 }
0x1077   :  { %1652 = vrot.lane.b32.xlu0 %v1558_v29, %s4631_s28 }
0x1078   :  { %1727 = vrot.lane.b32.xlu1 %v1650_v30, %s4631_s28 }
0x10e9   :  { %v1653_v57 = vpop.permute.xlu0 %1652 }
0x10ea   :  { %v1728_v31 = vpop.permute.xlu1 %1727  ;;  %4002 = vmatmul.mubr.msk.f32.vlgmr.msra.gmra.mrb[22].mxu0 %vm99_vm1, %v1653_v57 }
0x10eb   :  { %4013 = vmatmul.mubr.msk.f32.vlgmr.msra.gmra.mrb[18].mxu1 %vm99_vm1, %v1728_v31  ;;  %4331 = vmatpush3.bf16.msra.mxu0 %v4774_v9 }
0x10ec   :  { %4332 = vmatprep.subr.bf16.mxu0 %v4627_v0  ;;  %4023 = vmatprep.mubr.msk.f32.mxu0 %vm4628_vm0, %v4629_v1 }
0x10ed   :  { %4337 = vmatpush3.bf16.msra.mxu1 %v4833_v40  ;;  %4034 = vmatprep.mubr.msk.f32.mxu1 %vm4628_vm0, %v4629_v1 }
0x10ee   :  { %4338 = vmatprep.subr.bf16.mxu1 %v4627_v0 }
0x10ef   :  { %4334 = vmatpush3.bf16.msra.mxu0 %v4781_v14 }
0x10f0   :  { %4341 = vmatprep.subr.bf16.mxu0 %v4627_v0 }
0x10f1   :  { %4340 = vmatpush3.bf16.msra.mxu1 %v4848_v46 }
0x10f2   :  { %4024 = vmatmul.mubr.msk.f32.vlgmr.msra.gmra.mrb[24].mxu0 %vm99_vm1, %v1728_v31  ;;  %4347 = vmatprep.subr.bf16.mxu1 %v4627_v0 }
0x10f3   :  { %4343 = vmatpush3.bf16.msra.mxu0 %v4825_v36  ;;  %4045 = vmatprep.mubr.msk.f32.mxu0 %vm4628_vm0, %v4629_v1 }
0x10f4   :  { %4344 = vmatprep.subr.bf16.mxu0 %v4627_v0 }
0x10f7   :  { %4346 = vmatpush3.bf16.msra.mxu0 %v4850_v47 }
0x10f8   :  { %4353 = vmatprep.subr.bf16.mxu0 %v4627_v0 }
0x11bd   :  { %v1722_v33 = vpop.f32.mrb[22].mxu0 }
0x11be   :  { %v1797_v34 = vpop.f32.mrb[18].mxu1  ;;  %v4003_v35 = vpop.f32.mrb[23].mxu0 }
0x11bf   :  { %v1798_v37 = vadd.f32 %v1797_v34, %v1722_v33  ;;  %v4014_v38 = vpop.f32.mrb[19].mxu1  ;;  %v4632_v35 = vmov 0  }
0x11c0   :  { %4452 = vset.pattern.permute.xlu0 %v4632_v35  ;;  %4453 = vset.pattern.permute.xlu1 %v4632_v35 }
0x11c1   :  { %v1801_v32 = vadd.f32 %v4914_v2, %v1798_v37 }
0x11c3   :  { %4498 = vtanh.f32 %v1801_v32 }
0x11c5   :  { %v1888_v39 = vpop.f32.mrb[24].mxu0 }
0x11c6   :  { %v1892_v41 = vadd.f32 %v1888_v39, %v4895_v61  ;;  %v4025_v42 = vpop.f32.mrb[25].mxu0 }
0x11c7   :  { %v2359_v42 = vld [vmem:[#allocation6 + $0x8] sm:$0xff] }
0x11c8   :  { %v1893_v43 = vadd.f32 %v1892_v41, %v4799_v19  ;;  %v2358_v41 = vld [vmem:[#allocation6] sm:$0xff] }
0x11ca   :  { %4500 = vtanh.f32 %v1893_v43  ;;  %v5167_v43 = vpack.c.bf16 %v2359_v42, %v2358_v41 }
0x11cd   :  { %v4499_v44 = vpop.eup %4498 }
0x11ce   :  { %v1803_v54 = vmul.f32 %v4499_v44, %v4805_v23  ;;  %v2360_v44 = vld [vmem:[#allocation6 + $0x10] sm:$0xff] }
0x11d0   :  { %v1804_v45 = vadd.f32 %v1803_v54, %v4810_v25  ;;  %v2361_v54 = vld [vmem:[#allocation6 + $0x18] sm:$0xff] }
0x11d2   :  { %1807 = vrot.lane.b32.xlu0 %v1804_v45, %s4630_s2  ;;  %v1805_v60 = vmul.f32 %v1804_v45, %v1552_v21 }
0x11d4   :  { %v4501_v48 = vpop.eup %4500 }
0x11d5   :  { %v1895_v49 = vmul.f32 %v4501_v48, %v4805_v23 }
0x11d7   :  { %v1896_v51 = vadd.f32 %v1895_v49, %v4810_v25  ;;  %v5172_v49 = vpack.c.bf16 %v2361_v54, %v2360_v44  ;;  %v5273_v54 = vld [vmem:[%s5437_s6 + $0x8] sm:$0xff] }
0x11d9   :  { %1899 = vrot.lane.b32.xlu1 %v1896_v51, %s4630_s2  ;;  %v1897_v3 = vmul.f32 %v1896_v51, %v5080_v22 }
0x1244   :  { %v1808_v52 = vpop.permute.xlu0 %1807 }
0x1245   :  { %v1810_v61 = vmul.f32 %v1808_v52, %v1804_v45 }
0x1247   :  { %1812 = vrot.lane.b32.xlu0 %v1810_v61, %s4631_s28 }
0x124b   :  { %v1900_v53 = vpop.permute.xlu1 %1899 }
0x124c   :  { %v1902_v58 = vmul.f32 %v1900_v53, %v1896_v51 }
0x124e   :  { %1904 = vrot.lane.b32.xlu1 %v1902_v58, %s4631_s28 }
0x12b9   :  { %v1813_v62 = vpop.permute.xlu0 %1812 }
0x12ba   :  { %v1815_v63 = vadd.f32 %v1813_v62, %v1805_v60 }
0x12bc   :  { %4502 = vtanh.f32 %v1815_v63 }
0x12c0   :  { %v1905_v4 = vpop.permute.xlu1 %1904 }
0x12c1   :  { %v1907_v5 = vadd.f32 %v1905_v4, %v1897_v3 }
0x12c3   :  { %4504 = vtanh.f32 %v1907_v5 }
0x12c6   :  { %v4503_v55 = vpop.eup %4502 }
0x12c7   :  { %1818 = vrot.lane.b32.xlu0 %v4503_v55, %s4630_s2  ;;  %v5200_v55 = vld [vmem:[%s5437_s6] sm:$0xff] }
0x12cd   :  { %v4505_v6 = vpop.eup %4504 }
0x12ce   :  { %1910 = vrot.lane.b32.xlu1 %v4505_v6, %s4630_s2 }
0x1339   :  { %v1819_v7 = vpop.permute.xlu0 %1818 }
0x133a   :  { %v1821_v8 = vmul.f32 %v1819_v7, %v1804_v45 }
0x133c   :  { %1915 = vrot.lane.b32.xlu0 %v1821_v8, %s4631_s28 }
0x1340   :  { %v1911_v10 = vpop.permute.xlu1 %1910 }
0x1341   :  { %v1913_v11 = vmul.f32 %v1911_v10, %v1896_v51 }
0x1343   :  { %1990 = vrot.lane.b32.xlu1 %v1913_v11, %s4631_s28  ;;  %v5206_v11 = vld [vmem:[%s5440_s9] sm:$0xff] }
0x13ae   :  { %v1916_v56 = vpop.permute.xlu0 %1915 }
0x13af   :  { %4035 = vmatmul.mubr.msk.f32.vlgmr.msra.gmra.mrb[20].mxu1 %vm99_vm1, %v1916_v56  ;;  %v5212_v56 = vld [vmem:[%s5441_s10] sm:$0xff] }
0x13b0   :  { %4349 = vmatpush3.bf16.msra.mxu1 %v4774_v9  ;;  %4056 = vmatprep.mubr.msk.f32.mxu1 %vm4628_vm0, %v4629_v1 }
0x13b1   :  { %4350 = vmatprep.subr.bf16.mxu1 %v4627_v0 }
0x13b4   :  { %4352 = vmatpush3.bf16.msra.mxu1 %v4781_v14 }
0x13b5   :  { %v1991_v12 = vpop.permute.xlu1 %1990  ;;  %4359 = vmatprep.subr.bf16.mxu1 %v4627_v0 }
0x13b6   :  { %4046 = vmatmul.mubr.msk.f32.vlgmr.msra.gmra.mrb[26].mxu0 %vm99_vm1, %v1991_v12 }
0x13b7   :  { %4057 = vmatmul.mubr.msk.f32.vlgmr.msra.gmra.mrb[22].mxu1 %vm99_vm1, %v1991_v12  ;;  %4355 = vmatpush3.bf16.msra.mxu0 %v4833_v40 }
0x13b8   :  { %4361 = vmatpush3.bf16.msra.mxu1 %v4825_v36  ;;  %4356 = vmatprep.subr.bf16.mxu0 %v4627_v0 }
0x13b9   :  { %4362 = vmatprep.subr.bf16.mxu1 %v4627_v0  ;;  %4078 = vmatprep.mubr.msk.f32.mxu1 %vm4628_vm0, %v4629_v1 }
0x13ba   :  { %4067 = vmatprep.mubr.msk.f32.mxu0 %vm4628_vm0, %v4629_v1 }
0x13bb   :  { %4358 = vmatpush3.bf16.msra.mxu0 %v4848_v46 }
0x13bc   :  { %4364 = vmatpush3.bf16.msra.mxu1 %v4850_v47  ;;  %4365 = vmatprep.subr.bf16.mxu0 %v4627_v0 }
0x13bd   :  { %4371 = vmatprep.subr.bf16.mxu1 %v4627_v0 }
0x1482   :  { %v1985_v9 = vpop.f32.mrb[20].mxu1 }
0x1483   :  { %v4036_v14 = vpop.f32.mrb[21].mxu1 }
0x1489   :  { %v2060_v36 = vpop.f32.mrb[26].mxu0 }
0x148a   :  { %v2061_v40 = vadd.f32 %v2060_v36, %v1985_v9  ;;  %v2151_v13 = vpop.f32.mrb[22].mxu1  ;;  %v4047_v15 = vpop.f32.mrb[27].mxu0 }
0x148b   :  { %v2155_v17 = vadd.f32 %v4893_v59, %v2151_v13  ;;  %v4058_v18 = vpop.f32.mrb[23].mxu1 }
0x148c   :  { %v2064_v16 = vadd.f32 %v4914_v2, %v2061_v40 }
0x148d   :  { %v2156_v20 = vadd.f32 %v2155_v17, %v4799_v19 }
0x148e   :  { %4506 = vtanh.f32 %v2064_v16 }
0x148f   :  { %4508 = vtanh.f32 %v2156_v20 }
0x1498   :  { %v4507_v46 = vpop.eup %4506 }
0x1499   :  { %v4509_v47 = vpop.eup %4508  ;;  %v2066_v21 = vmul.f32 %v4507_v46, %v4805_v23 }
0x149a   :  { %v2158_v22 = vmul.f32 %v4509_v47, %v4805_v23 }
0x149b   :  { %v2067_v24 = vadd.f32 %v2066_v21, %v4810_v25 }
0x149c   :  { %v2159_v26 = vadd.f32 %v2158_v22, %v4810_v25  ;;  %v2461_v22 = vld [vmem:[#allocation6 + $0x20] sm:$0xff] }
0x149d   :  { %2070 = vrot.lane.b32.xlu0 %v2067_v24, %s4630_s2  ;;  %v2068_v29 = vmul.f32 %v2067_v24, %v1815_v63  ;;  %v5193_v63 = vld [vmem:[%s5439_s8] sm:$0xff] }
0x149e   :  { %2162 = vrot.lane.b32.xlu1 %v2159_v26, %s4630_s2  ;;  %v2160_v30 = vmul.f32 %v2159_v26, %v1907_v5 }
0x150f   :  { %v2071_v59 = vpop.permute.xlu0 %2070 }
0x1510   :  { %v2163_v27 = vpop.permute.xlu1 %2162  ;;  %v2073_v28 = vmul.f32 %v2071_v59, %v2067_v24 }
0x1511   :  { %v2165_v19 = vmul.f32 %v2163_v27, %v2159_v26  ;;  %v2464_v27 = vld [vmem:[#allocation6 + $0x38] sm:$0xff] }
0x1512   :  { %2075 = vrot.lane.b32.xlu0 %v2073_v28, %s4631_s28 }
0x1513   :  { %2167 = vrot.lane.b32.xlu1 %v2165_v19, %s4631_s28 }
0x1584   :  { %v2076_v57 = vpop.permute.xlu0 %2075 }
0x1585   :  { %v2168_v23 = vpop.permute.xlu1 %2167  ;;  %v5156_v31 = vadd.f32 %v2076_v57, %v2068_v29  ;;  %v2457_v57 = vld [vmem:[#allocation4 + $0x28] sm:$0xff] }
0x1586   :  { %v5158_v33 = vadd.f32 %v2168_v23, %v2160_v30  ;;  %v2456_v30 = vld [vmem:[#allocation4 + $0x20] sm:$0xff] }
0x1587   :  { %4510 = vtanh.f32 %v5156_v31  ;;  %v5239_v23 = vpack.c.bf16 %v2457_v57, %v2456_v30 }
0x1588   :  { %4512 = vtanh.f32 %v5158_v33 }
0x1591   :  { %v4511_v25 = vpop.eup %4510 }
0x1592   :  { %v4513_v34 = vpop.eup %4512  ;;  %2081 = vrot.lane.b32.xlu0 %v4511_v25, %s4630_s2 }
0x1593   :  { %2173 = vrot.lane.b32.xlu1 %v4513_v34, %s4630_s2 }
0x1604   :  { %v2082_v37 = vpop.permute.xlu0 %2081 }
0x1605   :  { %v2174_v38 = vpop.permute.xlu1 %2173  ;;  %v2084_v32 = vmul.f32 %v2082_v37, %v2067_v24  ;;  %v2462_v24 = vld [vmem:[#allocation6 + $0x28] sm:$0xff] }
0x1606   :  { %v2176_v39 = vmul.f32 %v2174_v38, %v2159_v26  ;;  %v2463_v26 = vld [vmem:[#allocation6 + $0x30] sm:$0xff]  ;;  %v5229_v59 = vpack.c.bf16 %v2462_v24, %v2461_v22 }
0x1607   :  { %2178 = vrot.lane.b32.xlu0 %v2084_v32, %s4631_s28  ;;  %v5232_v19 = vpack.c.bf16 %v2464_v27, %v2463_v26 }
0x1608   :  { %2253 = vrot.lane.b32.xlu1 %v2176_v39, %s4631_s28 }
0x160b   :  { %2353 = vperm.xlu0 %4452, %v4869_v50   ;;  %v5187_v50 = vld [vmem:[%s5438_s7] sm:$0xff] }
0x1679   :  { %v2179_v45 = vpop.permute.xlu0 %2178 }
0x167a   :  { %v2254_v48 = vpop.permute.xlu1 %2253  ;;  %4068 = vmatmul.mubr.msk.f32.vlgmr.msra.gmra.mrb[28].mxu0 %vm99_vm1, %v2179_v45 }
0x167b   :  { %4079 = vmatmul.mubr.msk.f32.vlgmr.msra.gmra.mrb[24].mxu1 %vm99_vm1, %v2254_v48  ;;  %4367 = vmatpush3.bf16.msra.mxu0 %v5167_v43 }
0x167c   :  { %4368 = vmatprep.subr.bf16.mxu0 %v4627_v0  ;;  %4089 = vmatprep.mubr.msk.f32.mxu0 %vm4628_vm0, %v4629_v1 }
0x167d   :  { %4100 = vmatprep.mubr.msk.f32.mxu1 %vm4628_vm0, %v4629_v1  ;;  %4373 = vmatpush3.bf16.msra.mxu1 %v5229_v59 }
0x167e   :  { %4374 = vmatprep.subr.bf16.mxu1 %v4627_v0 }
0x167f   :  { %4370 = vmatpush3.bf16.msra.mxu0 %v5172_v49 }
0x1680   :  { %4377 = vmatprep.subr.bf16.mxu0 %v4627_v0 }
0x1681   :  { %4376 = vmatpush3.bf16.msra.mxu1 %v5232_v19 }
0x1682   :  { %4090 = vmatmul.mubr.msk.f32.vlgmr.msra.gmra.mrb[30].mxu0 %vm99_vm1, %v2254_v48  ;;  %4383 = vmatprep.subr.bf16.mxu1 %v4627_v0 }
0x1683   :  { %4111 = vmatprep.mubr.msk.f32.mxu0 %vm4628_vm0, %v4629_v1  ;;  %4379 = vmatpush3.bf16.msra.mxu0 %v5239_v23 }
0x1684   :  { %4380 = vmatprep.subr.bf16.mxu0 %v4627_v0 }
0x168a   :  { %v2354_v51 = vpop.permute.xlu0 %2353 }
0x168b   :  { %v2356_v58 = vmul.f32 %v2354_v51, %v5187_v50 }
0x168d   :  { %v2357_v4 = vadd.f32 %v2356_v58, %v5193_v63 }
0x174d   :  { %v2248_v52 = vpop.f32.mrb[28].mxu0 }
0x174e   :  { %v2323_v61 = vpop.f32.mrb[24].mxu1  ;;  %v4069_v53 = vpop.f32.mrb[29].mxu0 }
0x174f   :  { %v2324_v60 = vadd.f32 %v2323_v61, %v2248_v52  ;;  %v4080_v62 = vpop.f32.mrb[25].mxu1 }
0x1751   :  { %v2327_v3 = vadd.f32 %v4914_v2, %v2324_v60 }
0x1753   :  { %4514 = vtanh.f32 %v2327_v3 }
0x1755   :  { %v2428_v5 = vpop.f32.mrb[30].mxu0 }
0x1756   :  { %v2432_v6 = vadd.f32 %v2428_v5, %v2357_v4  ;;  %v4091_v7 = vpop.f32.mrb[31].mxu0  ;;  %v2350_v4 = vld [vmem:[%s5442_s11] sm:$0xff] }
0x1758   :  { %v2434_v8 = vadd.f32 %v5200_v55, %v2432_v6 }
0x175a   :  { %4516 = vtanh.f32 %v2434_v8 }
0x175d   :  { %v4515_v10 = vpop.eup %4514 }
0x175e   :  { %v2329_v2 = vmul.f32 %v5206_v11, %v4515_v10 }
0x1760   :  { %v2330_v12 = vadd.f32 %v5212_v56, %v2329_v2 }
0x1762   :  { %2333 = vrot.lane.b32.xlu1 %v2330_v12, %s4630_s2  ;;  %v2331_v18 = vmul.f32 %v2330_v12, %v5156_v31  ;;  %v2458_v31 = vld [vmem:[#allocation4 + $0x30] sm:$0xff] }
0x1764   :  { %v4517_v9 = vpop.eup %4516 }
0x1765   :  { %v2436_v14 = vmul.f32 %v5206_v11, %v4517_v9 }
0x1767   :  { %v2437_v36 = vadd.f32 %v5212_v56, %v2436_v14 }
0x1769   :  { %2440 = vrot.lane.b32.xlu1 %v2437_v36, %s4630_s2  ;;  %v2438_v46 = vmul.f32 %v2437_v36, %v5158_v33  ;;  %v2459_v33 = vld [vmem:[#allocation4 + $0x38] sm:$0xff] }
0x176a   :  { %v5243_v25 = vpack.c.bf16 %v2459_v33, %v2458_v31 }
0x176c   :  { %4382 = vmatpush3.bf16.msra.mxu0 %v5243_v25 }
0x176d   :  { %4389 = vmatprep.subr.bf16.mxu0 %v4627_v0 }
0x17d4   :  { %v2334_v40 = vpop.permute.xlu1 %2333 }
0x17d5   :  { %v2336_v13 = vmul.f32 %v2334_v40, %v2330_v12  ;;  %v5296_v40 = vld [vmem:[%s5443_s12] sm:$0xff]  ;;  %s4634_s12 = smov 1  }
0x17d7   :  { %2338 = vrot.lane.b32.xlu0 %v2336_v13, %s4631_s28 }
0x17db   :  { %v2441_v15 = vpop.permute.xlu1 %2440 }
0x17dc   :  { %v2443_v17 = vmul.f32 %v2441_v15, %v2437_v36 }
0x17de   :  { %2445 = vrot.lane.b32.xlu1 %v2443_v17, %s4631_s28 }
0x1849   :  { %v2339_v16 = vpop.permute.xlu0 %2338 }
0x184a   :  { %v5222_v20 = vadd.f32 %v2339_v16, %v2331_v18 }
0x184c   :  { %4518 = vtanh.f32 %v5222_v20 }
0x1850   :  { %v2446_v47 = vpop.permute.xlu1 %2445 }
0x1851   :  { %v5226_v21 = vadd.f32 %v2446_v47, %v2438_v46 }
0x1853   :  { %4520 = vtanh.f32 %v5226_v21 }
0x1856   :  { %v4519_v28 = vpop.eup %4518 }
0x1857   :  { %2344 = vrot.lane.b32.xlu0 %v4519_v28, %s4630_s2 }
0x185d   :  { %v4521_v29 = vpop.eup %4520 }
0x185e   :  { %2451 = vrot.lane.b32.xlu1 %v4521_v29, %s4630_s2 }
0x18c9   :  { %v2345_v34 = vpop.permute.xlu0 %2344 }
0x18ca   :  { %v2347_v35 = vmul.f32 %v2345_v34, %v2330_v12 }
0x18cc   :  { %2466 = vrot.lane.b32.xlu0 %v2347_v35, %s4631_s28 }
0x18d0   :  { %v2452_v37 = vpop.permute.xlu1 %2451 }
0x18d1   :  { %v2454_v38 = vmul.f32 %v2452_v37, %v2437_v36 }
0x18d3   :  { %2541 = vrot.lane.b32.xlu1 %v2454_v38, %s4631_s28 }
0x193e   :  { %v2467_v32 = vpop.permute.xlu0 %2466 }
0x193f   :  { %4101 = vmatmul.mubr.msk.f32.vlgmr.msra.gmra.mrb[26].mxu1 %vm99_vm1, %v2467_v32 }
0x1940   :  { %4385 = vmatpush3.bf16.msra.mxu1 %v5167_v43  ;;  %4122 = vmatprep.mubr.msk.f32.mxu1 %vm4628_vm0, %v4629_v1 }
0x1941   :  { %4386 = vmatprep.subr.bf16.mxu1 %v4627_v0 }
0x1944   :  { %4388 = vmatpush3.bf16.msra.mxu1 %v5172_v49 }
0x1945   :  { %v2542_v39 = vpop.permute.xlu1 %2541  ;;  %4395 = vmatprep.subr.bf16.mxu1 %v4627_v0 }
0x1946   :  { %4112 = vmatmul.mubr.msk.f32.vlgmr.msra.gmra.mrb[32].mxu0 %vm99_vm1, %v2542_v39 }
0x1947   :  { %4123 = vmatmul.mubr.msk.f32.vlgmr.msra.gmra.mrb[28].mxu1 %vm99_vm1, %v2542_v39  ;;  %4391 = vmatpush3.bf16.msra.mxu0 %v5229_v59 }
0x1948   :  { %4392 = vmatprep.subr.bf16.mxu0 %v4627_v0  ;;  %4133 = vmatprep.mubr.msk.f32.mxu0 %vm4628_vm0, %v4629_v1 }
0x1949   :  { %4397 = vmatpush3.bf16.msra.mxu1 %v5239_v23  ;;  %4144 = vmatprep.mubr.msk.f32.mxu1 %vm4628_vm0, %v4629_v1 }
0x194a   :  { %4398 = vmatprep.subr.bf16.mxu1 %v4627_v0 }
0x194b   :  { %4394 = vmatpush3.bf16.msra.mxu0 %v5232_v19 }
0x194c   :  { %4401 = vmatprep.subr.bf16.mxu0 %v4627_v0 }
0x194d   :  { %4400 = vmatpush3.bf16.msra.mxu1 %v5243_v25 }
0x194e   :  { %4407 = vmatprep.subr.bf16.mxu1 %v4627_v0 }
0x1a12   :  { %v2536_v41 = vpop.f32.mrb[26].mxu1 }
0x1a13   :  { %v4102_v42 = vpop.f32.mrb[27].mxu1 }
0x1a19   :  { %v2611_v44 = vpop.f32.mrb[32].mxu0 }
0x1a1a   :  { %v2612_v45 = vadd.f32 %v2611_v44, %v2536_v41  ;;  %v2730_v48 = vpop.f32.mrb[28].mxu1  ;;  %v4113_v51 = vpop.f32.mrb[33].mxu0 }
0x1a1b   :  { %v4124_v52 = vpop.f32.mrb[29].mxu1 }
0x1a1c   :  { %v2617_v61 = vadd.f32 %v5273_v54, %v2612_v45 }
0x1a1e   :  { %4522 = vtanh.f32 %v2617_v61 }
0x1a28   :  { %v4523_v53 = vpop.eup %4522 }
0x1a29   :  { %v2619_v58 = vmul.f32 %v5206_v11, %v4523_v53 }
0x1a2b   :  { %v2620_v60 = vadd.f32 %v5212_v56, %v2619_v58 }
0x1a2d   :  { %2623 = vrot.lane.b32.xlu0 %v2620_v60, %s4630_s2  ;;  %v2621_v5 = vmul.f32 %v2620_v60, %v5222_v20 }
0x1a9f   :  { %v2624_v62 = vpop.permute.xlu0 %2623 }
0x1aa0   :  { %v2626_v3 = vmul.f32 %v2624_v62, %v2620_v60 }
0x1aa2   :  { %2628 = vrot.lane.b32.xlu1 %v2626_v3, %s4631_s28 }
0x1aa6   :  { %2639 = vrot.lane.b32.xlu1 %v2350_v4, %s4633_s19 }
0x1b14   :  { %v2629_v6 = vpop.permute.xlu1 %2628 }
0x1b15   :  { %v5284_v7 = vadd.f32 %v2629_v6, %v2621_v5 }
0x1b17   :  { %4524 = vtanh.f32 %v5284_v7 }
0x1b18   :  { %v5288_v2 = vpop.permute.xlu1 %2639 }
0x1b21   :  { %v4525_v8 = vpop.eup %4524 }
0x1b22   :  { %2634 = vrot.lane.b32.xlu0 %v4525_v8, %s4630_s2 }
0x1b94   :  { %v2635_v10 = vpop.permute.xlu0 %2634 }
0x1b95   :  { %v2637_v12 = vmul.f32 %v2635_v10, %v2620_v60 }
0x1b97   :  { %v2642_v9 = vmul.f32 %v5288_v2, %v2637_v12 }
0x1b99   :  { %2644 = vrot.lane.b32.xlu0 %v2642_v9, %s4631_s28 }
0x1c0b   :  { %v2645_v14 = vpop.permute.xlu0 %2644 }
0x1c0c   :  { %v2647_v36 = vsel %vm99_vm1, %v2645_v14, 0.0 }
0x1c0d   :  { %2648 = vadd.xlane.f32.xlu1 %v2647_v36 }
0x1c9a   :  { %v2649_v13 = vpop.xlane.xlu1 %2648 }
0x1c9b   :  { %v2650_v15 = vadd.f32 %v2649_v13, %v5296_v40 }
0x1c9d   :  { %2652 = vst.msk [vmem:[%s5444_s13] sm:$0xff] %vm2651_vm2, %v2650_v15  ;;  %2655 = vperm.xlu0 %4452, %v2650_v15  }
0x1d1c   :  { %v2656_v17 = vpop.permute.xlu0 %2655 }
0x1d1d   :  { %v2658_v18 = vmul.f32 %v2656_v17, %v5187_v50 }
0x1d1f   :  { %v2659_v16 = vadd.f32 %v2658_v18, %v5193_v63 }
0x1d21   :  { %v2734_v20 = vadd.f32 %v2730_v48, %v2659_v16 }
0x1d23   :  { %v2736_v46 = vadd.f32 %v2734_v20, %v5200_v55 }
0x1d25   :  { %4526 = vtanh.f32 %v2736_v46 }
0x1d2f   :  { %v4527_v47 = vpop.eup %4526 }
0x1d30   :  { %v2738_v22 = vmul.f32 %v5206_v11, %v4527_v47 }
0x1d32   :  { %v2739_v24 = vadd.f32 %v5212_v56, %v2738_v22 }
0x1d34   :  { %2742 = vrot.lane.b32.xlu0 %v2739_v24, %s4630_s2  ;;  %v2740_v28 = vmul.f32 %v2739_v24, %v5226_v21 }
0x1da6   :  { %v2743_v26 = vpop.permute.xlu0 %2742 }
0x1da7   :  { %v2745_v27 = vmul.f32 %v2743_v26, %v2739_v24 }
0x1da9   :  { %2747 = vrot.lane.b32.xlu0 %v2745_v27, %s4631_s28 }
0x1e1b   :  { %v2748_v29 = vpop.permute.xlu0 %2747 }
0x1e1c   :  { %v5310_v30 = vadd.f32 %v2748_v29, %v2740_v28 }
0x1e1e   :  { %4528 = vtanh.f32 %v5310_v30 }
0x1e28   :  { %v4529_v57 = vpop.eup %4528 }
0x1e29   :  { %2753 = vrot.lane.b32.xlu0 %v4529_v57, %s4630_s2 }
0x1e2d   :  { %2766 = vrot.lane.b32.xlu0 %v2637_v12, %s4631_s28 }
0x1e9b   :  { %v2754_v31 = vpop.permute.xlu0 %2753 }
0x1e9c   :  { %v2756_v33 = vmul.f32 %v2754_v31, %v2739_v24 }
0x1e9e   :  { %2841 = vrot.lane.b32.xlu0 %v2756_v33, %s4631_s28 }
0x1e9f   :  { %v2767_v34 = vpop.permute.xlu0 %2766 }
0x1ea0   :  { %4134 = vmatmul.mubr.msk.f32.vlgmr.msra.gmra.mrb[34].mxu0 %vm99_vm1, %v2767_v34 }
0x1ea1   :  { %4403 = vmatpush3.bf16.msra.mxu0 %v5167_v43  ;;  %4155 = vmatprep.mubr.msk.f32.mxu0 %vm4628_vm0, %v4629_v1 }
0x1ea2   :  { %4404 = vmatprep.subr.bf16.mxu0 %v4627_v0 }
0x1ea5   :  { %4406 = vmatpush3.bf16.msra.mxu0 %v5172_v49 }
0x1ea6   :  { %4413 = vmatprep.subr.bf16.mxu0 %v4627_v0 }
0x1f10   :  { %v2842_v21 = vpop.permute.xlu0 %2841 }
0x1f11   :  { %4145 = vmatmul.mubr.msk.f32.vlgmr.msra.gmra.mrb[30].mxu1 %vm99_vm1, %v2842_v21  ;;  %4156 = vmatmul.mubr.msk.f32.vlgmr.msra.gmra.mrb[36].mxu0 %vm99_vm1, %v2842_v21 }
0x1f12   :  { %4409 = vmatpush3.bf16.msra.mxu1 %v5229_v59  ;;  %4166 = vmatprep.mubr.msk.f32.mxu1 %vm4628_vm0, %v4629_v1 }
0x1f13   :  { %4410 = vmatprep.subr.bf16.mxu1 %v4627_v0  ;;  %4415 = vmatpush3.bf16.msra.mxu0 %v5239_v23 }
0x1f14   :  { %4416 = vmatprep.subr.bf16.mxu0 %v4627_v0  ;;  %4177 = vmatprep.mubr.msk.f32.mxu0 %vm4628_vm0, %v4629_v1 }
0x1f16   :  { %4412 = vmatpush3.bf16.msra.mxu1 %v5232_v19 }
0x1f17   :  { %4419 = vmatprep.subr.bf16.mxu1 %v4627_v0  ;;  %4418 = vmatpush3.bf16.msra.mxu0 %v5243_v25 }
0x1f18   :  { %4425 = vmatprep.subr.bf16.mxu0 %v4627_v0 }
0x1f73   :  { %v2836_v35 = vpop.f32.mrb[34].mxu0 }
0x1f74   :  { %v4135_v37 = vpop.f32.mrb[35].mxu0 }
0x1fe4   :  { %v2911_v38 = vpop.f32.mrb[30].mxu1  ;;  %v3028_v32 = vpop.f32.mrb[36].mxu0 }
0x1fe5   :  { %v2912_v39 = vadd.f32 %v2911_v38, %v2836_v35  ;;  %v4146_v41 = vpop.f32.mrb[31].mxu1  ;;  %v4157_v42 = vpop.f32.mrb[37].mxu0 }
0x1fe7   :  { %v2916_v44 = vadd.f32 %v5273_v54, %v2912_v39 }
0x1fe9   :  { %4530 = vtanh.f32 %v2916_v44 }
0x1ff3   :  { %v4531_v45 = vpop.eup %4530 }
0x1ff4   :  { %v2918_v48 = vmul.f32 %v5206_v11, %v4531_v45 }
0x1ff6   :  { %v2919_v51 = vadd.f32 %v5212_v56, %v2918_v48 }
0x1ff8   :  { %2922 = vrot.lane.b32.xlu0 %v2919_v51, %s4630_s2  ;;  %v2920_v53 = vmul.f32 %v2919_v51, %v5284_v7 }
0x206a   :  { %v2923_v52 = vpop.permute.xlu0 %2922 }
0x206b   :  { %v2925_v61 = vmul.f32 %v2923_v52, %v2919_v51 }
0x206d   :  { %2927 = vrot.lane.b32.xlu0 %v2925_v61, %s4631_s28 }
0x20df   :  { %v2928_v58 = vpop.permute.xlu0 %2927 }
0x20e0   :  { %v5343_v60 = vadd.f32 %v2928_v58, %v2920_v53 }
0x20e2   :  { %4532 = vtanh.f32 %v5343_v60 }
0x20ec   :  { %v4533_v62 = vpop.eup %4532 }
0x20ed   :  { %2933 = vrot.lane.b32.xlu0 %v4533_v62, %s4630_s2 }
0x215f   :  { %v2934_v3 = vpop.permute.xlu0 %2933 }
0x2160   :  { %v2936_v4 = vmul.f32 %v2934_v3, %v2919_v51 }
0x2162   :  { %v2937_v5 = vmul.f32 %v2936_v4, %v5288_v2 }
0x2164   :  { %2939 = vrot.lane.b32.xlu1 %v2937_v5, %s4631_s28 }
0x21d6   :  { %v2940_v6 = vpop.permute.xlu1 %2939 }
0x21d7   :  { %v2942_v8 = vsel %vm99_vm1, %v2940_v6, 0.0 }
0x21d8   :  { %2943 = vadd.xlane.f32.xlu0 %v2942_v8 }
0x2265   :  { %v2944_v10 = vpop.xlane.xlu0 %2943 }
0x2266   :  { %v5351_v7 = vadd.f32 %v2944_v10, %v5296_v40 }
0x2268   :  { %2953 = vperm.xlu1 %4453, %v5351_v7  }
0x22e7   :  { %v2954_v12 = vpop.permute.xlu1 %2953 }
0x22e8   :  { %v2956_v9 = vmul.f32 %v2954_v12, %v5187_v50 }
0x22ea   :  { %v2957_v14 = vadd.f32 %v2956_v9, %v5193_v63 }
0x22ec   :  { %v3032_v36 = vadd.f32 %v3028_v32, %v2957_v14 }
0x22ee   :  { %v3034_v13 = vadd.f32 %v3032_v36, %v5200_v55 }
0x22f0   :  { %4534 = vtanh.f32 %v3034_v13 }
0x22fa   :  { %v4535_v15 = vpop.eup %4534 }
0x22fb   :  { %v3036_v17 = vmul.f32 %v5206_v11, %v4535_v15 }
0x22fd   :  { %v3037_v18 = vadd.f32 %v5212_v56, %v3036_v17 }
0x22ff   :  { %3040 = vrot.lane.b32.xlu1 %v3037_v18, %s4630_s2  ;;  %v3038_v46 = vmul.f32 %v3037_v18, %v5310_v30 }
0x2371   :  { %v3041_v16 = vpop.permute.xlu1 %3040 }
0x2372   :  { %v3043_v20 = vmul.f32 %v3041_v16, %v3037_v18 }
0x2374   :  { %3045 = vrot.lane.b32.xlu1 %v3043_v20, %s4631_s28 }
0x23e6   :  { %v3046_v47 = vpop.permute.xlu1 %3045 }
0x23e7   :  { %v5362_v22 = vadd.f32 %v3046_v47, %v3038_v46 }
0x23e9   :  { %4536 = vtanh.f32 %v5362_v22 }
0x23f3   :  { %v4537_v24 = vpop.eup %4536 }
0x23f4   :  { %3051 = vrot.lane.b32.xlu1 %v4537_v24, %s4630_s2 }
0x23f8   :  { %3064 = vrot.lane.b32.xlu1 %v2936_v4, %s4631_s28 }
0x2466   :  { %v3052_v26 = vpop.permute.xlu1 %3051 }
0x2467   :  { %v3054_v27 = vmul.f32 %v3052_v26, %v3037_v18 }
0x2469   :  { %3139 = vrot.lane.b32.xlu0 %v3054_v27, %s4631_s28 }
0x246a   :  { %v3065_v28 = vpop.permute.xlu1 %3064 }
0x246b   :  { %4167 = vmatmul.mubr.msk.f32.vlgmr.msra.gmra.mrb[32].mxu1 %vm99_vm1, %v3065_v28 }
0x246c   :  { %4421 = vmatpush3.bf16.msra.mxu1 %v5167_v43  ;;  %4188 = vmatprep.mubr.msk.f32.mxu1 %vm4628_vm0, %v4629_v1 }
0x246d   :  { %4422 = vmatprep.subr.bf16.mxu1 %v4627_v0 }
0x2470   :  { %4424 = vmatpush3.bf16.msra.mxu1 %v5172_v49 }
0x2471   :  { %4431 = vmatprep.subr.bf16.mxu1 %v4627_v0 }
0x24db   :  { %v3140_v29 = vpop.permute.xlu0 %3139 }
0x24dc   :  { %4178 = vmatmul.mubr.msk.f32.vlgmr.msra.gmra.mrb[38].mxu0 %vm99_vm1, %v3140_v29  ;;  %4189 = vmatmul.mubr.msk.f32.vlgmr.msra.gmra.mrb[34].mxu1 %vm99_vm1, %v3140_v29 }
0x24dd   :  { %4427 = vmatpush3.bf16.msra.mxu0 %v5229_v59  ;;  %4199 = vmatprep.mubr.msk.f32.mxu0 %vm4628_vm0, %v4629_v1 }
0x24de   :  { %4428 = vmatprep.subr.bf16.mxu0 %v4627_v0  ;;  %4433 = vmatpush3.bf16.msra.mxu1 %v5239_v23 }
0x24df   :  { %4434 = vmatprep.subr.bf16.mxu1 %v4627_v0  ;;  %4210 = vmatprep.mubr.msk.f32.mxu1 %vm4628_vm0, %v4629_v1 }
0x24e1   :  { %4430 = vmatpush3.bf16.msra.mxu0 %v5232_v19 }
0x24e2   :  { %4436 = vmatpush3.bf16.msra.mxu1 %v5243_v25 }
0x253e   :  { %v3134_v43 = vpop.f32.mrb[32].mxu1 }
0x253f   :  { %v4168_v49 = vpop.f32.mrb[33].mxu1 }
0x25af   :  { %v3209_v30 = vpop.f32.mrb[38].mxu0  ;;  %v3326_v59 = vpop.f32.mrb[34].mxu1 }
0x25b0   :  { %v3210_v57 = vadd.f32 %v3209_v30, %v3134_v43  ;;  %v4179_v31 = vpop.f32.mrb[39].mxu0  ;;  %v4190_v33 = vpop.f32.mrb[35].mxu1 }
0x25b2   :  { %v3214_v34 = vadd.f32 %v5273_v54, %v3210_v57 }
0x25b4   :  { %4538 = vtanh.f32 %v3214_v34 }
0x25be   :  { %v4539_v23 = vpop.eup %4538 }
0x25bf   :  { %v3216_v0 = vmul.f32 %v5206_v11, %v4539_v23 }
0x25c1   :  { %v3217_v21 = vadd.f32 %v5212_v56, %v3216_v0 }
0x25c3   :  { %3220 = vrot.lane.b32.xlu1 %v3217_v21, %s4630_s2  ;;  %v3218_v25 = vmul.f32 %v3217_v21, %v5343_v60 }
0x2635   :  { %v3221_v1 = vpop.permute.xlu1 %3220 }
0x2636   :  { %v3223_v19 = vmul.f32 %v3221_v1, %v3217_v21 }
0x2638   :  { %3225 = vrot.lane.b32.xlu1 %v3223_v19, %s4631_s28 }
0x26aa   :  { %v3226_v35 = vpop.permute.xlu1 %3225 }
0x26ab   :  { %v3228_v37 = vadd.f32 %v3226_v35, %v3218_v25 }
0x26ad   :  { %4540 = vtanh.f32 %v3228_v37 }
0x26b7   :  { %v4541_v38 = vpop.eup %4540 }
0x26b8   :  { %3231 = vrot.lane.b32.xlu1 %v4541_v38, %s4630_s2 }
0x272a   :  { %v3232_v32 = vpop.permute.xlu1 %3231 }
0x272b   :  { %v3234_v39 = vmul.f32 %v3232_v32, %v3217_v21 }
0x272d   :  { %v3235_v41 = vmul.f32 %v3234_v39, %v5288_v2 }
0x272f   :  { %3237 = vrot.lane.b32.xlu1 %v3235_v41, %s4631_s28 }
0x27a1   :  { %v3238_v42 = vpop.permute.xlu1 %3237 }
0x27a2   :  { %v3240_v44 = vsel %vm99_vm1, %v3238_v42, 0.0 }
0x27a3   :  { %3241 = vadd.xlane.f32.xlu1 %v3240_v44 }
0x2830   :  { %v3242_v45 = vpop.xlane.xlu1 %3241 }
0x2831   :  { %v3243_v48 = vadd.f32 %v3242_v45, %v5296_v40 }
0x2833   :  { %3251 = vperm.xlu0 %4452, %v3243_v48  }
0x28b2   :  { %v3252_v51 = vpop.permute.xlu0 %3251 }
0x28b3   :  { %v3254_v52 = vmul.f32 %v3252_v51, %v5187_v50 }
0x28b5   :  { %v3255_v61 = vadd.f32 %v3254_v52, %v5193_v63 }
0x28b7   :  { %v3330_v53 = vadd.f32 %v3326_v59, %v3255_v61 }
0x28b9   :  { %v3332_v58 = vadd.f32 %v3330_v53, %v5200_v55 }
0x28bb   :  { %4542 = vtanh.f32 %v3332_v58 }
0x28c5   :  { %v4543_v60 = vpop.eup %4542 }
0x28c6   :  { %v3334_v62 = vmul.f32 %v5206_v11, %v4543_v60 }
0x28c8   :  { %v3335_v3 = vadd.f32 %v5212_v56, %v3334_v62 }
0x28ca   :  { %3338 = vrot.lane.b32.xlu0 %v3335_v3, %s4630_s2  ;;  %v3336_v6 = vmul.f32 %v3335_v3, %v5362_v22 }
0x293c   :  { %v3339_v4 = vpop.permute.xlu0 %3338 }
0x293d   :  { %v3341_v5 = vmul.f32 %v3339_v4, %v3335_v3 }
0x293f   :  { %3343 = vrot.lane.b32.xlu0 %v3341_v5, %s4631_s28 }
0x29b1   :  { %v3344_v50 = vpop.permute.xlu0 %3343 }
0x29b2   :  { %v3346_v8 = vadd.f32 %v3344_v50, %v3336_v6 }
0x29b4   :  { %4544 = vtanh.f32 %v3346_v8 }
0x29be   :  { %v4545_v63 = vpop.eup %4544 }
0x29bf   :  { %3349 = vrot.lane.b32.xlu0 %v4545_v63, %s4630_s2 }
0x29c3   :  { %3362 = vrot.lane.b32.xlu0 %v3234_v39, %s4631_s28 }
0x2a31   :  { %v3350_v55 = vpop.permute.xlu0 %3349 }
0x2a32   :  { %v3352_v10 = vmul.f32 %v3350_v55, %v3335_v3 }
0x2a34   :  { %3437 = vrot.lane.b32.xlu0 %v3352_v10, %s4631_s28 }
0x2a35   :  { %v3363_v12 = vpop.permute.xlu0 %3362 }
0x2a36   :  { %4200 = vmatmul.mubr.msk.f32.vlgmr.msra.gmra.mrb[40].mxu0 %vm99_vm1, %v3363_v12 }
0x2aa6   :  { %v3438_v9 = vpop.permute.xlu0 %3437 }
0x2aa7   :  { %4211 = vmatmul.mubr.msk.f32.vlgmr.msra.gmra.mrb[36].mxu1 %vm99_vm1, %v3438_v9 }
0x2b09   :  { %v3432_v14 = vpop.f32.mrb[40].mxu0 }
0x2b0a   :  { %v4201_v36 = vpop.f32.mrb[41].mxu0 }
0x2b7a   :  { %v3507_v13 = vpop.f32.mrb[36].mxu1 }
0x2b7b   :  { %v3508_v15 = vadd.f32 %v3507_v13, %v3432_v14  ;;  %v4212_v17 = vpop.f32.mrb[37].mxu1 }
0x2b7d   :  { %v3512_v18 = vadd.f32 %v5273_v54, %v3508_v15 }
0x2b7f   :  { %4546 = vtanh.f32 %v3512_v18 }
0x2b89   :  { %v4547_v16 = vpop.eup %4546 }
0x2b8a   :  { %v3514_v20 = vmul.f32 %v5206_v11, %v4547_v16 }
0x2b8c   :  { %v3515_v46 = vadd.f32 %v5212_v56, %v3514_v20 }
0x2b8e   :  { %3518 = vrot.lane.b32.xlu0 %v3515_v46, %s4630_s2  ;;  %v3516_v24 = vmul.f32 %v3515_v46, %v3228_v37 }
0x2c00   :  { %v3519_v47 = vpop.permute.xlu0 %3518 }
0x2c01   :  { %v3521_v22 = vmul.f32 %v3519_v47, %v3515_v46 }
0x2c03   :  { %3523 = vrot.lane.b32.xlu0 %v3521_v22, %s4631_s28 }
0x2c75   :  { %v3524_v26 = vpop.permute.xlu0 %3523 }
0x2c76   :  { %v3526_v27 = vadd.f32 %v3524_v26, %v3516_v24 }
0x2c78   :  { %4548 = vtanh.f32 %v3526_v27 }
0x2c82   :  { %v4549_v28 = vpop.eup %4548 }
0x2c83   :  { %3529 = vrot.lane.b32.xlu0 %v4549_v28, %s4630_s2 }
0x2cf5   :  { %v3530_v54 = vpop.permute.xlu0 %3529 }
0x2cf6   :  { %v3532_v29 = vmul.f32 %v3530_v54, %v3515_v46 }
0x2cf8   :  { %v3533_v43 = vmul.f32 %v3532_v29, %v5288_v2 }
0x2cfa   :  { %3535 = vrot.lane.b32.xlu1 %v3533_v43, %s4631_s28  ;;  %s4636_s28 = smov 3  }
0x2cfe   :  { %2947 = vrot.lane.b32.xlu1 %v5351_v7, %s4634_s12 }
0x2d02   :  { %3245 = vrot.lane.b32.xlu1 %v3243_v48, %s4635_s25 }
0x2d6c   :  { %v3536_v11 = vpop.permute.xlu1 %3535 }
0x2d6d   :  { %v3538_v56 = vsel %vm99_vm1, %v3536_v11, 0.0 }
0x2d6e   :  { %3539 = vadd.xlane.f32.xlu0 %v3538_v56 }
0x2d70   :  { %v2948_v49 = vpop.permute.xlu1 %2947 }
0x2d71   :  { %2951 = vst.msk [vmem:[%s5444_s13] sm:$0xff] %vm2950_vm3, %v2948_v49 }
0x2d74   :  { %v3246_v30 = vpop.permute.xlu1 %3245 }
0x2d75   :  { %3249 = vst.msk [vmem:[%s5444_s13] sm:$0xff] %vm3248_vm4, %v3246_v30 }
0x2dfb   :  { %v3540_v2 = vpop.xlane.xlu0 %3539 }
0x2dfc   :  { %v3541_v7 = vadd.f32 %v3540_v2, %v5296_v40 }
0x2dfe   :  { %3543 = vrot.lane.b32.xlu1 %v3541_v7, %s4636_s28 }
0x2e70   :  { %v3544_v59 = vpop.permute.xlu1 %3543 }
0x2e71   :  { %3547 = vst.msk [vmem:[%s5444_s13] sm:$0xff] %vm3546_vm5, %v3544_v59 }
0x2e72   :  { %3552 = vsyncpa [#allocation3], 1 }
0x2e73   :  { %3553 = vsyncpa [#allocation5], 1 }

</bundles_post_ra>
